<compile_context>
chip_gen: v6e
topology: v6e:2x2x1
jax: 0.10.0
libtpu: 0.0.40
codegen_flags: <defaults>
</compile_context>

<pallas_src>
import functools

import jax
import jax.numpy as jnp
from jax.experimental import pallas as pl
from jax.experimental.pallas import tpu as pltpu

# ----------------------- synthetic "t5-base" config -----------------------
VOCAB = 64
D_MODEL = 32
N_HEADS = 4
D_HEAD = 8
D_INNER = N_HEADS * D_HEAD          # 32
D_FF = 64
NUM_BUCKETS = 32
MAX_DISTANCE = 128
EPS = 1e-6
NEG_INF = -1e9

PREFIX_SOFT_INDEX = [8, 6493, 13]
SUFFIX_SOFT_INDEX = [31484, 17, 10, 1]
CLASS_TOKEN_IDS = [7163, 11213, 27635, 2971, 3922, 24784, 4158]
NUM_CLASSES = len(CLASS_TOKEN_IDS)


# ------------------------- in-kernel helper math ---------------------------
def _rms(x, w):
    """T5 LayerNorm (RMSNorm, no mean subtraction, no bias). x:(M,D), w:(1,D)."""
    var = jnp.mean(x * x, axis=-1, keepdims=True)
    return x * jax.lax.rsqrt(var + EPS) * w


def _softmax(s):
    """Max-stabilized softmax over the last axis; divide on the EUP."""
    m = jnp.max(s, axis=-1, keepdims=True)
    e = jnp.exp(s - m)
    return e * pl.reciprocal(jnp.sum(e, axis=-1, keepdims=True), approx=True)


def _dot(a, b):
    return jnp.dot(a, b, preferred_element_type=jnp.float32)


def _dot_t(a, b):
    """(M,K) · (N,K)^T -> (M,N) without materializing a transpose."""
    return jax.lax.dot_general(
        a, b, (((1,), (1,)), ((), ())), preferred_element_type=jnp.float32)


def _ffn(x, wi, wo):
    return _dot(jnp.maximum(_dot(x, wi), 0.0), wo)   # T5 dense-relu-dense


# ----------------------------- fused kernel --------------------------------
def _fused_kernel(x_ref, blk_bias_ref, cross_mask_ref, enc_wqkv_ref,
                  dec_wkv_ref, sq_w_ref, ffn_wi_ref, ffn_wo_ref, ln_ref,
                  dec_start_ref, w_cls_ref, onehot_ref,
                  logits_ref, loss_ref):
    BL, Dv = x_ref.shape                      # (B*L, D)
    Bv = logits_ref.shape[0]

    # ------------- encoder layer (batch folded into token axis) -------------
    x = x_ref[...]                            # (B*L, D)
    h = _rms(x, ln_ref[0])
    qkv = _dot(h, enc_wqkv_ref[...])          # (B*L, 3*D_INNER) — fused QKV
    enc_wo = sq_w_ref[0]                      # (D_INNER, D)

    attn = jnp.zeros((BL, Dv), jnp.float32)
    for hh in range(N_HEADS):
        sl_q = slice(hh * D_HEAD, (hh + 1) * D_HEAD)
        sl_k = slice(D_INNER + hh * D_HEAD, D_INNER + (hh + 1) * D_HEAD)
        sl_v = slice(2 * D_INNER + hh * D_HEAD, 2 * D_INNER + (hh + 1) * D_HEAD)
        # Block-diagonal bias carries rel-pos bias + key mask + cross-batch
        # -1e9 mask, so one softmax over B*L keys == per-batch softmax.
        scores = _dot_t(qkv[:, sl_q], qkv[:, sl_k]) + blk_bias_ref[hh]
        p = _softmax(scores)                  # (B*L, B*L)
        attn = attn + _dot(_dot(p, qkv[:, sl_v]), enc_wo[sl_q, :])
    x = x + attn

    h = _rms(x, ln_ref[1])
    x = x + _ffn(h, ffn_wi_ref[0], ffn_wo_ref[0])
    enc_out = _rms(x, ln_ref[2])              # (B*L, D)

    # ----------------- decoder (single start token, id 0) ------------------
    # Self-attention over one token: softmax over one key == 1, so the output
    # is exactly hd @ Wv @ Wo; Wv@Wo is pre-folded into sq_w[1].
    d0 = dec_start_ref[...]                   # (1, D)
    d1 = d0 + _dot(_rms(d0, ln_ref[3]), sq_w_ref[1])          # (1, D)

    # Cross-attention: the query is identical for every batch element; the
    # per-batch key mask lives in cross_mask (B, B*L), so all batches are
    # handled by one (B, B*L) softmax per head.
    hd = _rms(d1, ln_ref[4])
    q_dec = _dot(hd, sq_w_ref[2])             # (1, D_INNER)
    kv = _dot(enc_out, dec_wkv_ref[...])      # (B*L, 2*D_INNER) — fused KV
    cmask = cross_mask_ref[...]               # (B, B*L)
    dec_wo = sq_w_ref[3]                      # (D_INNER, D)

    cross = jnp.zeros((Bv, Dv), jnp.float32)
    for hh in range(N_HEADS):
        sl_k = slice(hh * D_HEAD, (hh + 1) * D_HEAD)
        sl_v = slice(D_INNER + hh * D_HEAD, D_INNER + (hh + 1) * D_HEAD)
        s = _dot_t(q_dec[:, sl_k], kv[:, sl_k]) + cmask       # (B, B*L)
        p = _softmax(s)
        cross = cross + _dot(_dot(p, kv[:, sl_v]), dec_wo[sl_k, :])
    d2 = d1 + cross                           # (B, D)

    hd = _rms(d2, ln_ref[5])
    d3 = d2 + _ffn(hd, ffn_wi_ref[1], ffn_wo_ref[1])
    dec_out = _rms(d3, ln_ref[6])             # (B, D)

    # ---- tied LM head (d_model**-0.5 rescale) folded with class gather ----
    logits = _dot_t(dec_out * (Dv ** -0.5), w_cls_ref[...])   # (B, C)
    logits_ref[...] = logits

    # ---------------------- log_softmax + mean NLL -------------------------
    m = jnp.max(logits, axis=-1, keepdims=True)
    s = logits - m
    lse = jnp.log(jnp.sum(jnp.exp(s), axis=-1, keepdims=True))
    logp = s - lse
    nll = -jnp.sum(logp * onehot_ref[...]) / Bv
    loss_ref[...] = jnp.reshape(nll, (1, 1))


def fused_prompt_t5(x_flat, blk_bias, cross_mask, enc_wqkv, dec_wkv, sq_w,
                    ffn_wi, ffn_wo, ln_w, dec_start, w_cls, onehot):
    BL, D = x_flat.shape
    B, C = onehot.shape
    H = blk_bias.shape[0]

    def full(shape):
        nd = len(shape)
        return pl.BlockSpec(shape, lambda i, _nd=nd: (0,) * _nd)

    return pl.pallas_call(
        _fused_kernel,
        grid=(1,),
        in_specs=[
            full((BL, D)),                # x_flat
            full((H, BL, BL)),            # block-diagonal enc bias+mask
            full((B, BL)),                # cross-attn flat mask
            full((D, 3 * D_INNER)),       # fused encoder Wq|Wk|Wv
            full((D, 2 * D_INNER)),       # fused decoder-cross Wk|Wv
            full((4, D, D)),              # [enc_wo, dec_self Wv@Wo, dec_cross_wq, dec_cross_wo]
            full((2, D, D_FF)),           # ffn wi (enc, dec)
            full((2, D_FF, D)),           # ffn wo (enc, dec)
            full((7, 1, D)),              # layer norms
            full((1, D)),                 # decoder start-token embedding
            full((C, D)),                 # W_cls = shared[class_ids]
            full((B, C)),                 # label one-hot
        ],
        out_specs=(full((B, C)), full((1, 1))),
        out_shape=(jax.ShapeDtypeStruct((B, C), jnp.float32),
                   jax.ShapeDtypeStruct((1, 1), jnp.float32)),
        compiler_params=pltpu.CompilerParams(
            dimension_semantics=("arbitrary",)),
    )(x_flat, blk_bias, cross_mask, enc_wqkv, dec_wkv, sq_w, ffn_wi, ffn_wo,
      ln_w, dec_start, w_cls, onehot)


# ------------------------- XLA-side glue (cheap) ---------------------------
def _relative_position_bucket(relative_position, bidirectional, num_buckets,
                              max_distance):
    relative_buckets = jnp.zeros_like(relative_position)
    if bidirectional:
        num_buckets //= 2
        relative_buckets = relative_buckets + (
            relative_position > 0).astype(jnp.int32) * num_buckets
        relative_position = jnp.abs(relative_position)
    else:
        relative_position = -jnp.minimum(relative_position, 0)
    max_exact = num_buckets // 2
    is_small = relative_position < max_exact
    rp_f = jnp.maximum(relative_position, 1).astype(jnp.float32)
    rel_if_large = max_exact + (
        jnp.log(rp_f / max_exact) / jnp.log(max_distance / max_exact)
        * (num_buckets - max_exact)).astype(jnp.int32)
    rel_if_large = jnp.minimum(rel_if_large, num_buckets - 1)
    return relative_buckets + jnp.where(is_small, relative_position, rel_if_large)


def compute_position_bias(rel_bias_weight, q_len, k_len, bidirectional):
    ctx = jnp.arange(q_len, dtype=jnp.int32)[:, None]
    mem = jnp.arange(k_len, dtype=jnp.int32)[None, :]
    buckets = _relative_position_bucket(mem - ctx, bidirectional,
                                        NUM_BUCKETS, MAX_DISTANCE)
    values = jnp.take(rel_bias_weight, buckets, axis=0)     # (q, k, H)
    return jnp.transpose(values, (2, 0, 1))                  # (H, q, k)


def prompt_t5_cls_forward(params, input_ids, attention_mask, labels=None):
    B, S = input_ids.shape
    p_num, s_num = len(PREFIX_SOFT_INDEX), len(SUFFIX_SOFT_INDEX)
    L = p_num + S + s_num
    shared = params['shared']

    # Soft-prompt prefix/suffix + text embeddings (gather stays in XLA).
    prefix_emb = jnp.broadcast_to(params['prefix_soft'][None], (B, p_num, D_MODEL))
    suffix_emb = jnp.broadcast_to(params['suffix_soft'][None], (B, s_num, D_MODEL))
    text_emb = jnp.take(shared, input_ids, axis=0)
    input_emb = jnp.concatenate([prefix_emb, text_emb, suffix_emb], axis=1)
    x_flat = input_emb.reshape(B * L, D_MODEL)               # batch folded

    full_mask = jnp.concatenate(
        [jnp.ones((B, p_num), jnp.float32),
         attention_mask.astype(jnp.float32),
         jnp.ones((B, s_num), jnp.float32)], axis=1)         # (B, L)
    mask_add = (1.0 - full_mask) * NEG_INF                   # (B, L)

    # Encoder rel-pos bias + key mask, laid out block-diagonally over the
    # flattened (B*L) token axis; off-block entries get -1e9 so the in-kernel
    # softmax over B*L keys equals the per-batch softmax exactly.
    enc_bias = compute_position_bias(params['enc_rel_bias'], L, L,
                                     bidirectional=True)     # (H, L, L)
    comb = enc_bias[None] + mask_add[:, None, None, :]       # (B, H, L, L)
    blk_bias = jnp.full((N_HEADS, B * L, B * L), NEG_INF, jnp.float32)
    cross_mask = jnp.full((B, B * L), NEG_INF, jnp.float32)
    for b in range(B):
        blk_bias = blk_bias.at[:, b * L:(b + 1) * L, b * L:(b + 1) * L].set(comb[b])
        cross_mask = cross_mask.at[b, b * L:(b + 1) * L].set(mask_add[b])
    # (Decoder self-attn rel bias is a provable no-op for a single decoder
    #  token — softmax over one key — so it is not passed to the kernel.)

    # Pack weights (constants under jit).
    ea, ds, dc = params['enc_attn'], params['dec_self_attn'], params['dec_cross_attn']
    enc_wqkv = jnp.concatenate([ea['wq'], ea['wk'], ea['wv']], axis=1)  # (D, 3D)
    dec_wkv = jnp.concatenate([dc['wk'], dc['wv']], axis=1)             # (D, 2D)
    dsa_vw = ds['wv'] @ ds['wo']           # exact 1-token self-attn fold
    sq_w = jnp.stack([ea['wo'], dsa_vw, dc['wq'], dc['wo']])            # (4, D, D)
    ffn_wi = jnp.stack([params['enc_wi'], params['dec_wi']])
    ffn_wo = jnp.stack([params['enc_wo'], params['dec_wo']])
    ln_w = jnp.stack([params['enc_ln1'], params['enc_ln2'], params['enc_lnf'],
                      params['dec_ln1'], params['dec_ln2'], params['dec_ln3'],
                      params['dec_lnf']]).reshape(7, 1, D_MODEL)

    # LM head + class gather folded into one constant (C, D) matrix.
    class_ids = jnp.array([c % VOCAB for c in CLASS_TOKEN_IDS], dtype=jnp.int32)
    w_cls = shared[class_ids]                                           # (C, D)
    dec_start = shared[0:1]                                             # (1, D)

    if labels is None:
        onehot = jnp.zeros((B, NUM_CLASSES), jnp.float32)
    else:
        onehot = jax.nn.one_hot(labels, NUM_CLASSES, dtype=jnp.float32)

    logits, loss = fused_prompt_t5(x_flat, blk_bias, cross_mask, enc_wqkv,
                                   dec_wkv, sq_w, ffn_wi, ffn_wo, ln_w,
                                   dec_start, w_cls, onehot)
    if labels is None:
        return logits
    return loss[0, 0], logits


# --------------------------- parameter creation ----------------------------
def init_params(key):
    keys = iter(jax.random.split(key, 32))

    def nrm(shape, scale=0.02):
        return scale * jax.random.normal(next(keys), shape, dtype=jnp.float32)

    shared = nrm((VOCAB, D_MODEL), 1.0)
    prefix_ids = jnp.array([i % VOCAB for i in PREFIX_SOFT_INDEX], dtype=jnp.int32)
    suffix_ids = jnp.array([i % VOCAB for i in SUFFIX_SOFT_INDEX], dtype=jnp.int32)

    def attn_params():
        return dict(wq=nrm((D_MODEL, N_HEADS * D_HEAD)),
                    wk=nrm((D_MODEL, N_HEADS * D_HEAD)),
                    wv=nrm((D_MODEL, N_HEADS * D_HEAD)),
                    wo=nrm((N_HEADS * D_HEAD, D_MODEL)))

    ones = lambda: jnp.ones((D_MODEL,), jnp.float32)
    return dict(
        shared=shared,
        prefix_soft=shared[prefix_ids],          # soft prompt init = embedding rows
        suffix_soft=shared[suffix_ids],
        enc_ln1=ones(), enc_ln2=ones(), enc_lnf=ones(),
        enc_rel_bias=nrm((NUM_BUCKETS, N_HEADS)),
        enc_attn=attn_params(),
        enc_wi=nrm((D_MODEL, D_FF)), enc_wo=nrm((D_FF, D_MODEL)),
        dec_ln1=ones(), dec_ln2=ones(), dec_ln3=ones(), dec_lnf=ones(),
        dec_rel_bias=nrm((NUM_BUCKETS, N_HEADS)),   # no-op for 1-token decode
        dec_self_attn=attn_params(),
        dec_cross_attn=attn_params(),
        dec_wi=nrm((D_MODEL, D_FF)), dec_wo=nrm((D_FF, D_MODEL)),
    )


# ---------------------------------- main -----------------------------------
if __name__ == "__main__":
    key = jax.random.PRNGKey(0)
    pkey, ikey, lkey = jax.random.split(key, 3)

    params = init_params(pkey)

    B, S = 2, 8
    input_ids = jax.random.randint(ikey, (B, S), 0, VOCAB, dtype=jnp.int32)
    attention_mask = jnp.ones((B, S), jnp.int32).at[1, S - 1].set(0)   # one pad token
    labels = jax.random.randint(lkey, (B,), 0, NUM_CLASSES, dtype=jnp.int32)

    fwd = jax.jit(functools.partial(prompt_t5_cls_forward, params))
    loss, logits = fwd(input_ids, attention_mask, labels)
    jax.block_until_ready((loss, logits))

    assert logits.shape == (B, NUM_CLASSES) and logits.dtype == jnp.float32
    assert loss.shape == () and jnp.isfinite(loss)
    print("KERNEL_OK")
</pallas_src>

<mosaic_0001>
module attributes {stable_mosaic.version = 11 : i64} {
  func.func @_fused_kernel(%arg0: i32, %arg1: memref<30x32xf32, #tpu.memory_space<vmem>>, %arg2: memref<4x30x30xf32, #tpu.memory_space<vmem>>, %arg3: memref<2x30xf32, #tpu.memory_space<vmem>>, %arg4: memref<32x96xf32, #tpu.memory_space<vmem>>, %arg5: memref<32x64xf32, #tpu.memory_space<vmem>>, %arg6: memref<4x32x32xf32, #tpu.memory_space<vmem>>, %arg7: memref<2x32x64xf32, #tpu.memory_space<vmem>>, %arg8: memref<2x64x32xf32, #tpu.memory_space<vmem>>, %arg9: memref<7x1x32xf32, #tpu.memory_space<vmem>>, %arg10: memref<1x32xf32, #tpu.memory_space<vmem>>, %arg11: memref<7x32xf32, #tpu.memory_space<vmem>>, %arg12: memref<2x7xf32, #tpu.memory_space<vmem>>, %arg13: memref<2x7xf32, #tpu.memory_space<vmem>>, %arg14: memref<1x1xf32, #tpu.memory_space<vmem>>) attributes {dimension_semantics = [#tpu.dimension_semantics<arbitrary>], iteration_bounds = array<i64: 1>, scalar_prefetch = 0 : i64, scratch_operands = 0 : i64, tpu.core_type = #tpu.core_type<tc>, window_params = [{pipeline_mode = #tpu.pipeline_mode<synchronous>, transform_indices = @transform_0, window_bounds = array<i64: 30, 32>}, {pipeline_mode = #tpu.pipeline_mode<synchronous>, transform_indices = @transform_1, window_bounds = array<i64: 4, 30, 30>}, {pipeline_mode = #tpu.pipeline_mode<synchronous>, transform_indices = @transform_2, window_bounds = array<i64: 2, 30>}, {pipeline_mode = #tpu.pipeline_mode<synchronous>, transform_indices = @transform_3, window_bounds = array<i64: 32, 96>}, {pipeline_mode = #tpu.pipeline_mode<synchronous>, transform_indices = @transform_4, window_bounds = array<i64: 32, 64>}, {pipeline_mode = #tpu.pipeline_mode<synchronous>, transform_indices = @transform_5, window_bounds = array<i64: 4, 32, 32>}, {pipeline_mode = #tpu.pipeline_mode<synchronous>, transform_indices = @transform_6, window_bounds = array<i64: 2, 32, 64>}, {pipeline_mode = #tpu.pipeline_mode<synchronous>, transform_indices = @transform_7, window_bounds = array<i64: 2, 64, 32>}, {pipeline_mode = #tpu.pipeline_mode<synchronous>, transform_indices = @transform_8, window_bounds = array<i64: 7, 1, 32>}, {pipeline_mode = #tpu.pipeline_mode<synchronous>, transform_indices = @transform_9, window_bounds = array<i64: 1, 32>}, {pipeline_mode = #tpu.pipeline_mode<synchronous>, transform_indices = @transform_10, window_bounds = array<i64: 7, 32>}, {pipeline_mode = #tpu.pipeline_mode<synchronous>, transform_indices = @transform_11, window_bounds = array<i64: 2, 7>}, {pipeline_mode = #tpu.pipeline_mode<synchronous>, transform_indices = @transform_12, window_bounds = array<i64: 2, 7>}, {pipeline_mode = #tpu.pipeline_mode<synchronous>, transform_indices = @transform_13, window_bounds = array<i64: 1, 1>}]} {
    %c0 = arith.constant 0 : index
    %c0_0 = arith.constant 0 : index
    %0 = vector.load %arg1[%c0, %c0_0] : memref<30x32xf32, #tpu.memory_space<vmem>>, vector<30x32xf32>
    %c0_1 = arith.constant 0 : index
    %c0_2 = arith.constant 0 : index
    %c0_3 = arith.constant 0 : index
    %1 = vector.load %arg9[%c0_1, %c0_2, %c0_3] : memref<7x1x32xf32, #tpu.memory_space<vmem>>, vector<1x1x32xf32>
    %2 = vector.shape_cast %1 : vector<1x1x32xf32> to vector<1x32xf32>
    %3 = arith.mulf %0, %0 : vector<30x32xf32>
    %cst = arith.constant dense<0.000000e+00> : vector<30xf32>
    %4 = vector.multi_reduction <add>, %3, %cst [1] : vector<30x32xf32> to vector<30xf32>
    %5 = vector.shape_cast %4 : vector<30xf32> to vector<30x1xf32>
    %cst_4 = arith.constant 3.200000e+01 : f32
    %6 = vector.broadcast %cst_4 : f32 to vector<30x1xf32>
    %7 = arith.divf %5, %6 : vector<30x1xf32>
    %cst_5 = arith.constant 9.99999997E-7 : f32
    %8 = vector.broadcast %cst_5 : f32 to vector<30x1xf32>
    %9 = arith.addf %7, %8 : vector<30x1xf32>
    %10 = math.rsqrt %9 : vector<30x1xf32>
    %11 = vector.broadcast %10 : vector<30x1xf32> to vector<30x32xf32>
    %12 = arith.mulf %0, %11 : vector<30x32xf32>
    %13 = vector.broadcast %2 : vector<1x32xf32> to vector<30x32xf32>
    %14 = arith.mulf %12, %13 : vector<30x32xf32>
    %c0_6 = arith.constant 0 : index
    %c0_7 = arith.constant 0 : index
    %15 = vector.load %arg4[%c0_6, %c0_7] : memref<32x96xf32, #tpu.memory_space<vmem>>, vector<32x96xf32>
    %cst_8 = arith.constant dense<0.000000e+00> : vector<30x96xf32>
    %16 = tpu.matmul %14, %15, %cst_8 {dimension_numbers = #tpu.dot_dimension_numbers<[1], [0], [0], [1], [0, 0, 1, 1], [], []>} : vector<30x32xf32>, vector<32x96xf32>, vector<30x96xf32> -> vector<30x96xf32>
    %c0_9 = arith.constant 0 : index
    %c0_10 = arith.constant 0 : index
    %c0_11 = arith.constant 0 : index
    %17 = vector.load %arg6[%c0_9, %c0_10, %c0_11] : memref<4x32x32xf32, #tpu.memory_space<vmem>>, vector<1x32x32xf32>
    %18 = vector.shape_cast %17 : vector<1x32x32xf32> to vector<32x32xf32>
    %cst_12 = arith.constant 0.000000e+00 : f32
    %19 = vector.broadcast %cst_12 : f32 to vector<30x32xf32>
    %20 = vector.extract_strided_slice %16 {offsets = [0, 0], sizes = [30, 8], strides = [1, 1]} : vector<30x96xf32> to vector<30x8xf32>
    %21 = vector.extract_strided_slice %16 {offsets = [0, 32], sizes = [30, 8], strides = [1, 1]} : vector<30x96xf32> to vector<30x8xf32>
    %cst_13 = arith.constant dense<0.000000e+00> : vector<30x30xf32>
    %22 = tpu.matmul %20, %21, %cst_13 {dimension_numbers = #tpu.dot_dimension_numbers<[1], [1], [0], [0], [0, 0, 1, 0], [], []>} : vector<30x8xf32>, vector<30x8xf32>, vector<30x30xf32> -> vector<30x30xf32>
    %c0_14 = arith.constant 0 : index
    %c0_15 = arith.constant 0 : index
    %c0_16 = arith.constant 0 : index
    %23 = vector.load %arg2[%c0_14, %c0_15, %c0_16] : memref<4x30x30xf32, #tpu.memory_space<vmem>>, vector<1x30x30xf32>
    %24 = vector.shape_cast %23 : vector<1x30x30xf32> to vector<30x30xf32>
    %25 = arith.addf %22, %24 : vector<30x30xf32>
    %cst_17 = arith.constant dense<0xFF800000> : vector<30xf32>
    %26 = vector.multi_reduction <maximumf>, %25, %cst_17 [1] : vector<30x30xf32> to vector<30xf32>
    %27 = vector.shape_cast %26 : vector<30xf32> to vector<30x1xf32>
    %28 = vector.broadcast %27 : vector<30x1xf32> to vector<30x30xf32>
    %29 = arith.subf %25, %28 : vector<30x30xf32>
    %30 = math.exp %29 : vector<30x30xf32>
    %cst_18 = arith.constant dense<0.000000e+00> : vector<30xf32>
    %31 = vector.multi_reduction <add>, %30, %cst_18 [1] : vector<30x30xf32> to vector<30xf32>
    %32 = vector.shape_cast %31 : vector<30xf32> to vector<30x1xf32>
    %33 = tpu.reciprocal %32 {approx = true} : vector<30x1xf32> -> vector<30x1xf32>
    %34 = vector.broadcast %33 : vector<30x1xf32> to vector<30x30xf32>
    %35 = arith.mulf %30, %34 : vector<30x30xf32>
    %36 = vector.extract_strided_slice %16 {offsets = [0, 64], sizes = [30, 8], strides = [1, 1]} : vector<30x96xf32> to vector<30x8xf32>
    %cst_19 = arith.constant dense<0.000000e+00> : vector<30x8xf32>
    %37 = tpu.matmul %35, %36, %cst_19 {dimension_numbers = #tpu.dot_dimension_numbers<[1], [0], [0], [1], [0, 0, 1, 1], [], []>} : vector<30x30xf32>, vector<30x8xf32>, vector<30x8xf32> -> vector<30x8xf32>
    %38 = vector.extract_strided_slice %18 {offsets = [0, 0], sizes = [8, 32], strides = [1, 1]} : vector<32x32xf32> to vector<8x32xf32>
    %cst_20 = arith.constant dense<0.000000e+00> : vector<30x32xf32>
    %39 = tpu.matmul %37, %38, %cst_20 {dimension_numbers = #tpu.dot_dimension_numbers<[1], [0], [0], [1], [0, 0, 1, 1], [], []>} : vector<30x8xf32>, vector<8x32xf32>, vector<30x32xf32> -> vector<30x32xf32>
    %40 = arith.addf %19, %39 : vector<30x32xf32>
    %41 = vector.extract_strided_slice %16 {offsets = [0, 8], sizes = [30, 8], strides = [1, 1]} : vector<30x96xf32> to vector<30x8xf32>
    %42 = vector.extract_strided_slice %16 {offsets = [0, 40], sizes = [30, 8], strides = [1, 1]} : vector<30x96xf32> to vector<30x8xf32>
    %cst_21 = arith.constant dense<0.000000e+00> : vector<30x30xf32>
    %43 = tpu.matmul %41, %42, %cst_21 {dimension_numbers = #tpu.dot_dimension_numbers<[1], [1], [0], [0], [0, 0, 1, 0], [], []>} : vector<30x8xf32>, vector<30x8xf32>, vector<30x30xf32> -> vector<30x30xf32>
    %c1 = arith.constant 1 : index
    %c0_22 = arith.constant 0 : index
    %c0_23 = arith.constant 0 : index
    %44 = vector.load %arg2[%c1, %c0_22, %c0_23] : memref<4x30x30xf32, #tpu.memory_space<vmem>>, vector<1x30x30xf32>
    %45 = vector.shape_cast %44 : vector<1x30x30xf32> to vector<30x30xf32>
    %46 = arith.addf %43, %45 : vector<30x30xf32>
    %cst_24 = arith.constant dense<0xFF800000> : vector<30xf32>
    %47 = vector.multi_reduction <maximumf>, %46, %cst_24 [1] : vector<30x30xf32> to vector<30xf32>
    %48 = vector.shape_cast %47 : vector<30xf32> to vector<30x1xf32>
    %49 = vector.broadcast %48 : vector<30x1xf32> to vector<30x30xf32>
    %50 = arith.subf %46, %49 : vector<30x30xf32>
    %51 = math.exp %50 : vector<30x30xf32>
    %cst_25 = arith.constant dense<0.000000e+00> : vector<30xf32>
    %52 = vector.multi_reduction <add>, %51, %cst_25 [1] : vector<30x30xf32> to vector<30xf32>
    %53 = vector.shape_cast %52 : vector<30xf32> to vector<30x1xf32>
    %54 = tpu.reciprocal %53 {approx = true} : vector<30x1xf32> -> vector<30x1xf32>
    %55 = vector.broadcast %54 : vector<30x1xf32> to vector<30x30xf32>
    %56 = arith.mulf %51, %55 : vector<30x30xf32>
    %57 = vector.extract_strided_slice %16 {offsets = [0, 72], sizes = [30, 8], strides = [1, 1]} : vector<30x96xf32> to vector<30x8xf32>
    %cst_26 = arith.constant dense<0.000000e+00> : vector<30x8xf32>
    %58 = tpu.matmul %56, %57, %cst_26 {dimension_numbers = #tpu.dot_dimension_numbers<[1], [0], [0], [1], [0, 0, 1, 1], [], []>} : vector<30x30xf32>, vector<30x8xf32>, vector<30x8xf32> -> vector<30x8xf32>
    %59 = vector.extract_strided_slice %18 {offsets = [8, 0], sizes = [8, 32], strides = [1, 1]} : vector<32x32xf32> to vector<8x32xf32>
    %cst_27 = arith.constant dense<0.000000e+00> : vector<30x32xf32>
    %60 = tpu.matmul %58, %59, %cst_27 {dimension_numbers = #tpu.dot_dimension_numbers<[1], [0], [0], [1], [0, 0, 1, 1], [], []>} : vector<30x8xf32>, vector<8x32xf32>, vector<30x32xf32> -> vector<30x32xf32>
    %61 = arith.addf %40, %60 : vector<30x32xf32>
    %62 = vector.extract_strided_slice %16 {offsets = [0, 16], sizes = [30, 8], strides = [1, 1]} : vector<30x96xf32> to vector<30x8xf32>
    %63 = vector.extract_strided_slice %16 {offsets = [0, 48], sizes = [30, 8], strides = [1, 1]} : vector<30x96xf32> to vector<30x8xf32>
    %cst_28 = arith.constant dense<0.000000e+00> : vector<30x30xf32>
    %64 = tpu.matmul %62, %63, %cst_28 {dimension_numbers = #tpu.dot_dimension_numbers<[1], [1], [0], [0], [0, 0, 1, 0], [], []>} : vector<30x8xf32>, vector<30x8xf32>, vector<30x30xf32> -> vector<30x30xf32>
    %c2 = arith.constant 2 : index
    %c0_29 = arith.constant 0 : index
    %c0_30 = arith.constant 0 : index
    %65 = vector.load %arg2[%c2, %c0_29, %c0_30] : memref<4x30x30xf32, #tpu.memory_space<vmem>>, vector<1x30x30xf32>
    %66 = vector.shape_cast %65 : vector<1x30x30xf32> to vector<30x30xf32>
    %67 = arith.addf %64, %66 : vector<30x30xf32>
    %cst_31 = arith.constant dense<0xFF800000> : vector<30xf32>
    %68 = vector.multi_reduction <maximumf>, %67, %cst_31 [1] : vector<30x30xf32> to vector<30xf32>
    %69 = vector.shape_cast %68 : vector<30xf32> to vector<30x1xf32>
    %70 = vector.broadcast %69 : vector<30x1xf32> to vector<30x30xf32>
    %71 = arith.subf %67, %70 : vector<30x30xf32>
    %72 = math.exp %71 : vector<30x30xf32>
    %cst_32 = arith.constant dense<0.000000e+00> : vector<30xf32>
    %73 = vector.multi_reduction <add>, %72, %cst_32 [1] : vector<30x30xf32> to vector<30xf32>
    %74 = vector.shape_cast %73 : vector<30xf32> to vector<30x1xf32>
    %75 = tpu.reciprocal %74 {approx = true} : vector<30x1xf32> -> vector<30x1xf32>
    %76 = vector.broadcast %75 : vector<30x1xf32> to vector<30x30xf32>
    %77 = arith.mulf %72, %76 : vector<30x30xf32>
    %78 = vector.extract_strided_slice %16 {offsets = [0, 80], sizes = [30, 8], strides = [1, 1]} : vector<30x96xf32> to vector<30x8xf32>
    %cst_33 = arith.constant dense<0.000000e+00> : vector<30x8xf32>
    %79 = tpu.matmul %77, %78, %cst_33 {dimension_numbers = #tpu.dot_dimension_numbers<[1], [0], [0], [1], [0, 0, 1, 1], [], []>} : vector<30x30xf32>, vector<30x8xf32>, vector<30x8xf32> -> vector<30x8xf32>
    %80 = vector.extract_strided_slice %18 {offsets = [16, 0], sizes = [8, 32], strides = [1, 1]} : vector<32x32xf32> to vector<8x32xf32>
    %cst_34 = arith.constant dense<0.000000e+00> : vector<30x32xf32>
    %81 = tpu.matmul %79, %80, %cst_34 {dimension_numbers = #tpu.dot_dimension_numbers<[1], [0], [0], [1], [0, 0, 1, 1], [], []>} : vector<30x8xf32>, vector<8x32xf32>, vector<30x32xf32> -> vector<30x32xf32>
    %82 = arith.addf %61, %81 : vector<30x32xf32>
    %83 = vector.extract_strided_slice %16 {offsets = [0, 24], sizes = [30, 8], strides = [1, 1]} : vector<30x96xf32> to vector<30x8xf32>
    %84 = vector.extract_strided_slice %16 {offsets = [0, 56], sizes = [30, 8], strides = [1, 1]} : vector<30x96xf32> to vector<30x8xf32>
    %cst_35 = arith.constant dense<0.000000e+00> : vector<30x30xf32>
    %85 = tpu.matmul %83, %84, %cst_35 {dimension_numbers = #tpu.dot_dimension_numbers<[1], [1], [0], [0], [0, 0, 1, 0], [], []>} : vector<30x8xf32>, vector<30x8xf32>, vector<30x30xf32> -> vector<30x30xf32>
    %c3 = arith.constant 3 : index
    %c0_36 = arith.constant 0 : index
    %c0_37 = arith.constant 0 : index
    %86 = vector.load %arg2[%c3, %c0_36, %c0_37] : memref<4x30x30xf32, #tpu.memory_space<vmem>>, vector<1x30x30xf32>
    %87 = vector.shape_cast %86 : vector<1x30x30xf32> to vector<30x30xf32>
    %88 = arith.addf %85, %87 : vector<30x30xf32>
    %cst_38 = arith.constant dense<0xFF800000> : vector<30xf32>
    %89 = vector.multi_reduction <maximumf>, %88, %cst_38 [1] : vector<30x30xf32> to vector<30xf32>
    %90 = vector.shape_cast %89 : vector<30xf32> to vector<30x1xf32>
    %91 = vector.broadcast %90 : vector<30x1xf32> to vector<30x30xf32>
    %92 = arith.subf %88, %91 : vector<30x30xf32>
    %93 = math.exp %92 : vector<30x30xf32>
    %cst_39 = arith.constant dense<0.000000e+00> : vector<30xf32>
    %94 = vector.multi_reduction <add>, %93, %cst_39 [1] : vector<30x30xf32> to vector<30xf32>
    %95 = vector.shape_cast %94 : vector<30xf32> to vector<30x1xf32>
    %96 = tpu.reciprocal %95 {approx = true} : vector<30x1xf32> -> vector<30x1xf32>
    %97 = vector.broadcast %96 : vector<30x1xf32> to vector<30x30xf32>
    %98 = arith.mulf %93, %97 : vector<30x30xf32>
    %99 = vector.extract_strided_slice %16 {offsets = [0, 88], sizes = [30, 8], strides = [1, 1]} : vector<30x96xf32> to vector<30x8xf32>
    %cst_40 = arith.constant dense<0.000000e+00> : vector<30x8xf32>
    %100 = tpu.matmul %98, %99, %cst_40 {dimension_numbers = #tpu.dot_dimension_numbers<[1], [0], [0], [1], [0, 0, 1, 1], [], []>} : vector<30x30xf32>, vector<30x8xf32>, vector<30x8xf32> -> vector<30x8xf32>
    %101 = vector.extract_strided_slice %18 {offsets = [24, 0], sizes = [8, 32], strides = [1, 1]} : vector<32x32xf32> to vector<8x32xf32>
    %cst_41 = arith.constant dense<0.000000e+00> : vector<30x32xf32>
    %102 = tpu.matmul %100, %101, %cst_41 {dimension_numbers = #tpu.dot_dimension_numbers<[1], [0], [0], [1], [0, 0, 1, 1], [], []>} : vector<30x8xf32>, vector<8x32xf32>, vector<30x32xf32> -> vector<30x32xf32>
    %103 = arith.addf %82, %102 : vector<30x32xf32>
    %104 = arith.addf %0, %103 : vector<30x32xf32>
    %c1_42 = arith.constant 1 : index
    %c0_43 = arith.constant 0 : index
    %c0_44 = arith.constant 0 : index
    %105 = vector.load %arg9[%c1_42, %c0_43, %c0_44] : memref<7x1x32xf32, #tpu.memory_space<vmem>>, vector<1x1x32xf32>
    %106 = vector.shape_cast %105 : vector<1x1x32xf32> to vector<1x32xf32>
    %107 = arith.mulf %104, %104 : vector<30x32xf32>
    %cst_45 = arith.constant dense<0.000000e+00> : vector<30xf32>
    %108 = vector.multi_reduction <add>, %107, %cst_45 [1] : vector<30x32xf32> to vector<30xf32>
    %109 = vector.shape_cast %108 : vector<30xf32> to vector<30x1xf32>
    %cst_46 = arith.constant 3.200000e+01 : f32
    %110 = vector.broadcast %cst_46 : f32 to vector<30x1xf32>
    %111 = arith.divf %109, %110 : vector<30x1xf32>
    %cst_47 = arith.constant 9.99999997E-7 : f32
    %112 = vector.broadcast %cst_47 : f32 to vector<30x1xf32>
    %113 = arith.addf %111, %112 : vector<30x1xf32>
    %114 = math.rsqrt %113 : vector<30x1xf32>
    %115 = vector.broadcast %114 : vector<30x1xf32> to vector<30x32xf32>
    %116 = arith.mulf %104, %115 : vector<30x32xf32>
    %117 = vector.broadcast %106 : vector<1x32xf32> to vector<30x32xf32>
    %118 = arith.mulf %116, %117 : vector<30x32xf32>
    %c0_48 = arith.constant 0 : index
    %c0_49 = arith.constant 0 : index
    %c0_50 = arith.constant 0 : index
    %119 = vector.load %arg7[%c0_48, %c0_49, %c0_50] : memref<2x32x64xf32, #tpu.memory_space<vmem>>, vector<1x32x64xf32>
    %120 = vector.shape_cast %119 : vector<1x32x64xf32> to vector<32x64xf32>
    %c0_51 = arith.constant 0 : index
    %c0_52 = arith.constant 0 : index
    %c0_53 = arith.constant 0 : index
    %121 = vector.load %arg8[%c0_51, %c0_52, %c0_53] : memref<2x64x32xf32, #tpu.memory_space<vmem>>, vector<1x64x32xf32>
    %122 = vector.shape_cast %121 : vector<1x64x32xf32> to vector<64x32xf32>
    %cst_54 = arith.constant dense<0.000000e+00> : vector<30x64xf32>
    %123 = tpu.matmul %118, %120, %cst_54 {dimension_numbers = #tpu.dot_dimension_numbers<[1], [0], [0], [1], [0, 0, 1, 1], [], []>} : vector<30x32xf32>, vector<32x64xf32>, vector<30x64xf32> -> vector<30x64xf32>
    %cst_55 = arith.constant 0.000000e+00 : f32
    %124 = vector.broadcast %cst_55 : f32 to vector<30x64xf32>
    %125 = arith.maximumf %123, %124 : vector<30x64xf32>
    %cst_56 = arith.constant dense<0.000000e+00> : vector<30x32xf32>
    %126 = tpu.matmul %125, %122, %cst_56 {dimension_numbers = #tpu.dot_dimension_numbers<[1], [0], [0], [1], [0, 0, 1, 1], [], []>} : vector<30x64xf32>, vector<64x32xf32>, vector<30x32xf32> -> vector<30x32xf32>
    %127 = arith.addf %104, %126 : vector<30x32xf32>
    %c2_57 = arith.constant 2 : index
    %c0_58 = arith.constant 0 : index
    %c0_59 = arith.constant 0 : index
    %128 = vector.load %arg9[%c2_57, %c0_58, %c0_59] : memref<7x1x32xf32, #tpu.memory_space<vmem>>, vector<1x1x32xf32>
    %129 = vector.shape_cast %128 : vector<1x1x32xf32> to vector<1x32xf32>
    %130 = arith.mulf %127, %127 : vector<30x32xf32>
    %cst_60 = arith.constant dense<0.000000e+00> : vector<30xf32>
    %131 = vector.multi_reduction <add>, %130, %cst_60 [1] : vector<30x32xf32> to vector<30xf32>
    %132 = vector.shape_cast %131 : vector<30xf32> to vector<30x1xf32>
    %cst_61 = arith.constant 3.200000e+01 : f32
    %133 = vector.broadcast %cst_61 : f32 to vector<30x1xf32>
    %134 = arith.divf %132, %133 : vector<30x1xf32>
    %cst_62 = arith.constant 9.99999997E-7 : f32
    %135 = vector.broadcast %cst_62 : f32 to vector<30x1xf32>
    %136 = arith.addf %134, %135 : vector<30x1xf32>
    %137 = math.rsqrt %136 : vector<30x1xf32>
    %138 = vector.broadcast %137 : vector<30x1xf32> to vector<30x32xf32>
    %139 = arith.mulf %127, %138 : vector<30x32xf32>
    %140 = vector.broadcast %129 : vector<1x32xf32> to vector<30x32xf32>
    %141 = arith.mulf %139, %140 : vector<30x32xf32>
    %c0_63 = arith.constant 0 : index
    %c0_64 = arith.constant 0 : index
    %142 = vector.load %arg10[%c0_63, %c0_64] : memref<1x32xf32, #tpu.memory_space<vmem>>, vector<1x32xf32>
    %c3_65 = arith.constant 3 : index
    %c0_66 = arith.constant 0 : index
    %c0_67 = arith.constant 0 : index
    %143 = vector.load %arg9[%c3_65, %c0_66, %c0_67] : memref<7x1x32xf32, #tpu.memory_space<vmem>>, vector<1x1x32xf32>
    %144 = vector.shape_cast %143 : vector<1x1x32xf32> to vector<1x32xf32>
    %145 = arith.mulf %142, %142 : vector<1x32xf32>
    %cst_68 = arith.constant dense<0.000000e+00> : vector<1xf32>
    %146 = vector.multi_reduction <add>, %145, %cst_68 [1] : vector<1x32xf32> to vector<1xf32>
    %147 = vector.shape_cast %146 : vector<1xf32> to vector<1x1xf32>
    %cst_69 = arith.constant 3.200000e+01 : f32
    %148 = vector.broadcast %cst_69 : f32 to vector<1x1xf32>
    %149 = arith.divf %147, %148 : vector<1x1xf32>
    %cst_70 = arith.constant 9.99999997E-7 : f32
    %150 = vector.broadcast %cst_70 : f32 to vector<1x1xf32>
    %151 = arith.addf %149, %150 : vector<1x1xf32>
    %152 = math.rsqrt %151 : vector<1x1xf32>
    %153 = vector.broadcast %152 : vector<1x1xf32> to vector<1x32xf32>
    %154 = arith.mulf %142, %153 : vector<1x32xf32>
    %155 = arith.mulf %154, %144 : vector<1x32xf32>
    %c1_71 = arith.constant 1 : index
    %c0_72 = arith.constant 0 : index
    %c0_73 = arith.constant 0 : index
    %156 = vector.load %arg6[%c1_71, %c0_72, %c0_73] : memref<4x32x32xf32, #tpu.memory_space<vmem>>, vector<1x32x32xf32>
    %157 = vector.shape_cast %156 : vector<1x32x32xf32> to vector<32x32xf32>
    %cst_74 = arith.constant dense<0.000000e+00> : vector<1x32xf32>
    %158 = tpu.matmul %155, %157, %cst_74 {dimension_numbers = #tpu.dot_dimension_numbers<[1], [0], [0], [1], [0, 0, 1, 1], [], []>} : vector<1x32xf32>, vector<32x32xf32>, vector<1x32xf32> -> vector<1x32xf32>
    %159 = arith.addf %142, %158 : vector<1x32xf32>
    %c4 = arith.constant 4 : index
    %c0_75 = arith.constant 0 : index
    %c0_76 = arith.constant 0 : index
    %160 = vector.load %arg9[%c4, %c0_75, %c0_76] : memref<7x1x32xf32, #tpu.memory_space<vmem>>, vector<1x1x32xf32>
    %161 = vector.shape_cast %160 : vector<1x1x32xf32> to vector<1x32xf32>
    %162 = arith.mulf %159, %159 : vector<1x32xf32>
    %cst_77 = arith.constant dense<0.000000e+00> : vector<1xf32>
    %163 = vector.multi_reduction <add>, %162, %cst_77 [1] : vector<1x32xf32> to vector<1xf32>
    %164 = vector.shape_cast %163 : vector<1xf32> to vector<1x1xf32>
    %cst_78 = arith.constant 3.200000e+01 : f32
    %165 = vector.broadcast %cst_78 : f32 to vector<1x1xf32>
    %166 = arith.divf %164, %165 : vector<1x1xf32>
    %cst_79 = arith.constant 9.99999997E-7 : f32
    %167 = vector.broadcast %cst_79 : f32 to vector<1x1xf32>
    %168 = arith.addf %166, %167 : vector<1x1xf32>
    %169 = math.rsqrt %168 : vector<1x1xf32>
    %170 = vector.broadcast %169 : vector<1x1xf32> to vector<1x32xf32>
    %171 = arith.mulf %159, %170 : vector<1x32xf32>
    %172 = arith.mulf %171, %161 : vector<1x32xf32>
    %c2_80 = arith.constant 2 : index
    %c0_81 = arith.constant 0 : index
    %c0_82 = arith.constant 0 : index
    %173 = vector.load %arg6[%c2_80, %c0_81, %c0_82] : memref<4x32x32xf32, #tpu.memory_space<vmem>>, vector<1x32x32xf32>
    %174 = vector.shape_cast %173 : vector<1x32x32xf32> to vector<32x32xf32>
    %cst_83 = arith.constant dense<0.000000e+00> : vector<1x32xf32>
    %175 = tpu.matmul %172, %174, %cst_83 {dimension_numbers = #tpu.dot_dimension_numbers<[1], [0], [0], [1], [0, 0, 1, 1], [], []>} : vector<1x32xf32>, vector<32x32xf32>, vector<1x32xf32> -> vector<1x32xf32>
    %c0_84 = arith.constant 0 : index
    %c0_85 = arith.constant 0 : index
    %176 = vector.load %arg5[%c0_84, %c0_85] : memref<32x64xf32, #tpu.memory_space<vmem>>, vector<32x64xf32>
    %cst_86 = arith.constant dense<0.000000e+00> : vector<30x64xf32>
    %177 = tpu.matmul %141, %176, %cst_86 {dimension_numbers = #tpu.dot_dimension_numbers<[1], [0], [0], [1], [0, 0, 1, 1], [], []>} : vector<30x32xf32>, vector<32x64xf32>, vector<30x64xf32> -> vector<30x64xf32>
    %c0_87 = arith.constant 0 : index
    %c0_88 = arith.constant 0 : index
    %178 = vector.load %arg3[%c0_87, %c0_88] : memref<2x30xf32, #tpu.memory_space<vmem>>, vector<2x30xf32>
    %c3_89 = arith.constant 3 : index
    %c0_90 = arith.constant 0 : index
    %c0_91 = arith.constant 0 : index
    %179 = vector.load %arg6[%c3_89, %c0_90, %c0_91] : memref<4x32x32xf32, #tpu.memory_space<vmem>>, vector<1x32x32xf32>
    %180 = vector.shape_cast %179 : vector<1x32x32xf32> to vector<32x32xf32>
    %cst_92 = arith.constant 0.000000e+00 : f32
    %181 = vector.broadcast %cst_92 : f32 to vector<2x32xf32>
    %182 = vector.extract_strided_slice %175 {offsets = [0, 0], sizes = [1, 8], strides = [1, 1]} : vector<1x32xf32> to vector<1x8xf32>
    %183 = vector.extract_strided_slice %177 {offsets = [0, 0], sizes = [30, 8], strides = [1, 1]} : vector<30x64xf32> to vector<30x8xf32>
    %cst_93 = arith.constant dense<0.000000e+00> : vector<1x30xf32>
    %184 = tpu.matmul %182, %183, %cst_93 {dimension_numbers = #tpu.dot_dimension_numbers<[1], [1], [0], [0], [0, 0, 1, 0], [], []>} : vector<1x8xf32>, vector<30x8xf32>, vector<1x30xf32> -> vector<1x30xf32>
    %185 = vector.broadcast %184 : vector<1x30xf32> to vector<2x30xf32>
    %186 = arith.addf %185, %178 : vector<2x30xf32>
    %cst_94 = arith.constant dense<0xFF800000> : vector<2xf32>
    %187 = vector.multi_reduction <maximumf>, %186, %cst_94 [1] : vector<2x30xf32> to vector<2xf32>
    %188 = vector.shape_cast %187 : vector<2xf32> to vector<2x1xf32>
    %189 = vector.broadcast %188 : vector<2x1xf32> to vector<2x30xf32>
    %190 = arith.subf %186, %189 : vector<2x30xf32>
    %191 = math.exp %190 : vector<2x30xf32>
    %cst_95 = arith.constant dense<0.000000e+00> : vector<2xf32>
    %192 = vector.multi_reduction <add>, %191, %cst_95 [1] : vector<2x30xf32> to vector<2xf32>
    %193 = vector.shape_cast %192 : vector<2xf32> to vector<2x1xf32>
    %194 = tpu.reciprocal %193 {approx = true} : vector<2x1xf32> -> vector<2x1xf32>
    %195 = vector.broadcast %194 : vector<2x1xf32> to vector<2x30xf32>
    %196 = arith.mulf %191, %195 : vector<2x30xf32>
    %197 = vector.extract_strided_slice %177 {offsets = [0, 32], sizes = [30, 8], strides = [1, 1]} : vector<30x64xf32> to vector<30x8xf32>
    %cst_96 = arith.constant dense<0.000000e+00> : vector<2x8xf32>
    %198 = tpu.matmul %196, %197, %cst_96 {dimension_numbers = #tpu.dot_dimension_numbers<[1], [0], [0], [1], [0, 0, 1, 1], [], []>} : vector<2x30xf32>, vector<30x8xf32>, vector<2x8xf32> -> vector<2x8xf32>
    %199 = vector.extract_strided_slice %180 {offsets = [0, 0], sizes = [8, 32], strides = [1, 1]} : vector<32x32xf32> to vector<8x32xf32>
    %cst_97 = arith.constant dense<0.000000e+00> : vector<2x32xf32>
    %200 = tpu.matmul %198, %199, %cst_97 {dimension_numbers = #tpu.dot_dimension_numbers<[1], [0], [0], [1], [0, 0, 1, 1], [], []>} : vector<2x8xf32>, vector<8x32xf32>, vector<2x32xf32> -> vector<2x32xf32>
    %201 = arith.addf %181, %200 : vector<2x32xf32>
    %202 = vector.extract_strided_slice %175 {offsets = [0, 8], sizes = [1, 8], strides = [1, 1]} : vector<1x32xf32> to vector<1x8xf32>
    %203 = vector.extract_strided_slice %177 {offsets = [0, 8], sizes = [30, 8], strides = [1, 1]} : vector<30x64xf32> to vector<30x8xf32>
    %cst_98 = arith.constant dense<0.000000e+00> : vector<1x30xf32>
    %204 = tpu.matmul %202, %203, %cst_98 {dimension_numbers = #tpu.dot_dimension_numbers<[1], [1], [0], [0], [0, 0, 1, 0], [], []>} : vector<1x8xf32>, vector<30x8xf32>, vector<1x30xf32> -> vector<1x30xf32>
    %205 = vector.broadcast %204 : vector<1x30xf32> to vector<2x30xf32>
    %206 = arith.addf %205, %178 : vector<2x30xf32>
    %cst_99 = arith.constant dense<0xFF800000> : vector<2xf32>
    %207 = vector.multi_reduction <maximumf>, %206, %cst_99 [1] : vector<2x30xf32> to vector<2xf32>
    %208 = vector.shape_cast %207 : vector<2xf32> to vector<2x1xf32>
    %209 = vector.broadcast %208 : vector<2x1xf32> to vector<2x30xf32>
    %210 = arith.subf %206, %209 : vector<2x30xf32>
    %211 = math.exp %210 : vector<2x30xf32>
    %cst_100 = arith.constant dense<0.000000e+00> : vector<2xf32>
    %212 = vector.multi_reduction <add>, %211, %cst_100 [1] : vector<2x30xf32> to vector<2xf32>
    %213 = vector.shape_cast %212 : vector<2xf32> to vector<2x1xf32>
    %214 = tpu.reciprocal %213 {approx = true} : vector<2x1xf32> -> vector<2x1xf32>
    %215 = vector.broadcast %214 : vector<2x1xf32> to vector<2x30xf32>
    %216 = arith.mulf %211, %215 : vector<2x30xf32>
    %217 = vector.extract_strided_slice %177 {offsets = [0, 40], sizes = [30, 8], strides = [1, 1]} : vector<30x64xf32> to vector<30x8xf32>
    %cst_101 = arith.constant dense<0.000000e+00> : vector<2x8xf32>
    %218 = tpu.matmul %216, %217, %cst_101 {dimension_numbers = #tpu.dot_dimension_numbers<[1], [0], [0], [1], [0, 0, 1, 1], [], []>} : vector<2x30xf32>, vector<30x8xf32>, vector<2x8xf32> -> vector<2x8xf32>
    %219 = vector.extract_strided_slice %180 {offsets = [8, 0], sizes = [8, 32], strides = [1, 1]} : vector<32x32xf32> to vector<8x32xf32>
    %cst_102 = arith.constant dense<0.000000e+00> : vector<2x32xf32>
    %220 = tpu.matmul %218, %219, %cst_102 {dimension_numbers = #tpu.dot_dimension_numbers<[1], [0], [0], [1], [0, 0, 1, 1], [], []>} : vector<2x8xf32>, vector<8x32xf32>, vector<2x32xf32> -> vector<2x32xf32>
    %221 = arith.addf %201, %220 : vector<2x32xf32>
    %222 = vector.extract_strided_slice %175 {offsets = [0, 16], sizes = [1, 8], strides = [1, 1]} : vector<1x32xf32> to vector<1x8xf32>
    %223 = vector.extract_strided_slice %177 {offsets = [0, 16], sizes = [30, 8], strides = [1, 1]} : vector<30x64xf32> to vector<30x8xf32>
    %cst_103 = arith.constant dense<0.000000e+00> : vector<1x30xf32>
    %224 = tpu.matmul %222, %223, %cst_103 {dimension_numbers = #tpu.dot_dimension_numbers<[1], [1], [0], [0], [0, 0, 1, 0], [], []>} : vector<1x8xf32>, vector<30x8xf32>, vector<1x30xf32> -> vector<1x30xf32>
    %225 = vector.broadcast %224 : vector<1x30xf32> to vector<2x30xf32>
    %226 = arith.addf %225, %178 : vector<2x30xf32>
    %cst_104 = arith.constant dense<0xFF800000> : vector<2xf32>
    %227 = vector.multi_reduction <maximumf>, %226, %cst_104 [1] : vector<2x30xf32> to vector<2xf32>
    %228 = vector.shape_cast %227 : vector<2xf32> to vector<2x1xf32>
    %229 = vector.broadcast %228 : vector<2x1xf32> to vector<2x30xf32>
    %230 = arith.subf %226, %229 : vector<2x30xf32>
    %231 = math.exp %230 : vector<2x30xf32>
    %cst_105 = arith.constant dense<0.000000e+00> : vector<2xf32>
    %232 = vector.multi_reduction <add>, %231, %cst_105 [1] : vector<2x30xf32> to vector<2xf32>
    %233 = vector.shape_cast %232 : vector<2xf32> to vector<2x1xf32>
    %234 = tpu.reciprocal %233 {approx = true} : vector<2x1xf32> -> vector<2x1xf32>
    %235 = vector.broadcast %234 : vector<2x1xf32> to vector<2x30xf32>
    %236 = arith.mulf %231, %235 : vector<2x30xf32>
    %237 = vector.extract_strided_slice %177 {offsets = [0, 48], sizes = [30, 8], strides = [1, 1]} : vector<30x64xf32> to vector<30x8xf32>
    %cst_106 = arith.constant dense<0.000000e+00> : vector<2x8xf32>
    %238 = tpu.matmul %236, %237, %cst_106 {dimension_numbers = #tpu.dot_dimension_numbers<[1], [0], [0], [1], [0, 0, 1, 1], [], []>} : vector<2x30xf32>, vector<30x8xf32>, vector<2x8xf32> -> vector<2x8xf32>
    %239 = vector.extract_strided_slice %180 {offsets = [16, 0], sizes = [8, 32], strides = [1, 1]} : vector<32x32xf32> to vector<8x32xf32>
    %cst_107 = arith.constant dense<0.000000e+00> : vector<2x32xf32>
    %240 = tpu.matmul %238, %239, %cst_107 {dimension_numbers = #tpu.dot_dimension_numbers<[1], [0], [0], [1], [0, 0, 1, 1], [], []>} : vector<2x8xf32>, vector<8x32xf32>, vector<2x32xf32> -> vector<2x32xf32>
    %241 = arith.addf %221, %240 : vector<2x32xf32>
    %242 = vector.extract_strided_slice %175 {offsets = [0, 24], sizes = [1, 8], strides = [1, 1]} : vector<1x32xf32> to vector<1x8xf32>
    %243 = vector.extract_strided_slice %177 {offsets = [0, 24], sizes = [30, 8], strides = [1, 1]} : vector<30x64xf32> to vector<30x8xf32>
    %cst_108 = arith.constant dense<0.000000e+00> : vector<1x30xf32>
    %244 = tpu.matmul %242, %243, %cst_108 {dimension_numbers = #tpu.dot_dimension_numbers<[1], [1], [0], [0], [0, 0, 1, 0], [], []>} : vector<1x8xf32>, vector<30x8xf32>, vector<1x30xf32> -> vector<1x30xf32>
    %245 = vector.broadcast %244 : vector<1x30xf32> to vector<2x30xf32>
    %246 = arith.addf %245, %178 : vector<2x30xf32>
    %cst_109 = arith.constant dense<0xFF800000> : vector<2xf32>
    %247 = vector.multi_reduction <maximumf>, %246, %cst_109 [1] : vector<2x30xf32> to vector<2xf32>
    %248 = vector.shape_cast %247 : vector<2xf32> to vector<2x1xf32>
    %249 = vector.broadcast %248 : vector<2x1xf32> to vector<2x30xf32>
    %250 = arith.subf %246, %249 : vector<2x30xf32>
    %251 = math.exp %250 : vector<2x30xf32>
    %cst_110 = arith.constant dense<0.000000e+00> : vector<2xf32>
    %252 = vector.multi_reduction <add>, %251, %cst_110 [1] : vector<2x30xf32> to vector<2xf32>
    %253 = vector.shape_cast %252 : vector<2xf32> to vector<2x1xf32>
    %254 = tpu.reciprocal %253 {approx = true} : vector<2x1xf32> -> vector<2x1xf32>
    %255 = vector.broadcast %254 : vector<2x1xf32> to vector<2x30xf32>
    %256 = arith.mulf %251, %255 : vector<2x30xf32>
    %257 = vector.extract_strided_slice %177 {offsets = [0, 56], sizes = [30, 8], strides = [1, 1]} : vector<30x64xf32> to vector<30x8xf32>
    %cst_111 = arith.constant dense<0.000000e+00> : vector<2x8xf32>
    %258 = tpu.matmul %256, %257, %cst_111 {dimension_numbers = #tpu.dot_dimension_numbers<[1], [0], [0], [1], [0, 0, 1, 1], [], []>} : vector<2x30xf32>, vector<30x8xf32>, vector<2x8xf32> -> vector<2x8xf32>
    %259 = vector.extract_strided_slice %180 {offsets = [24, 0], sizes = [8, 32], strides = [1, 1]} : vector<32x32xf32> to vector<8x32xf32>
    %cst_112 = arith.constant dense<0.000000e+00> : vector<2x32xf32>
    %260 = tpu.matmul %258, %259, %cst_112 {dimension_numbers = #tpu.dot_dimension_numbers<[1], [0], [0], [1], [0, 0, 1, 1], [], []>} : vector<2x8xf32>, vector<8x32xf32>, vector<2x32xf32> -> vector<2x32xf32>
    %261 = arith.addf %241, %260 : vector<2x32xf32>
    %262 = vector.broadcast %159 : vector<1x32xf32> to vector<2x32xf32>
    %263 = arith.addf %262, %261 : vector<2x32xf32>
    %c5 = arith.constant 5 : index
    %c0_113 = arith.constant 0 : index
    %c0_114 = arith.constant 0 : index
    %264 = vector.load %arg9[%c5, %c0_113, %c0_114] : memref<7x1x32xf32, #tpu.memory_space<vmem>>, vector<1x1x32xf32>
    %265 = vector.shape_cast %264 : vector<1x1x32xf32> to vector<1x32xf32>
    %266 = arith.mulf %263, %263 : vector<2x32xf32>
    %cst_115 = arith.constant dense<0.000000e+00> : vector<2xf32>
    %267 = vector.multi_reduction <add>, %266, %cst_115 [1] : vector<2x32xf32> to vector<2xf32>
    %268 = vector.shape_cast %267 : vector<2xf32> to vector<2x1xf32>
    %cst_116 = arith.constant 3.200000e+01 : f32
    %269 = vector.broadcast %cst_116 : f32 to vector<2x1xf32>
    %270 = arith.divf %268, %269 : vector<2x1xf32>
    %cst_117 = arith.constant 9.99999997E-7 : f32
    %271 = vector.broadcast %cst_117 : f32 to vector<2x1xf32>
    %272 = arith.addf %270, %271 : vector<2x1xf32>
    %273 = math.rsqrt %272 : vector<2x1xf32>
    %274 = vector.broadcast %273 : vector<2x1xf32> to vector<2x32xf32>
    %275 = arith.mulf %263, %274 : vector<2x32xf32>
    %276 = vector.broadcast %265 : vector<1x32xf32> to vector<2x32xf32>
    %277 = arith.mulf %275, %276 : vector<2x32xf32>
    %c1_118 = arith.constant 1 : index
    %c0_119 = arith.constant 0 : index
    %c0_120 = arith.constant 0 : index
    %278 = vector.load %arg7[%c1_118, %c0_119, %c0_120] : memref<2x32x64xf32, #tpu.memory_space<vmem>>, vector<1x32x64xf32>
    %279 = vector.shape_cast %278 : vector<1x32x64xf32> to vector<32x64xf32>
    %c1_121 = arith.constant 1 : index
    %c0_122 = arith.constant 0 : index
    %c0_123 = arith.constant 0 : index
    %280 = vector.load %arg8[%c1_121, %c0_122, %c0_123] : memref<2x64x32xf32, #tpu.memory_space<vmem>>, vector<1x64x32xf32>
    %281 = vector.shape_cast %280 : vector<1x64x32xf32> to vector<64x32xf32>
    %cst_124 = arith.constant dense<0.000000e+00> : vector<2x64xf32>
    %282 = tpu.matmul %277, %279, %cst_124 {dimension_numbers = #tpu.dot_dimension_numbers<[1], [0], [0], [1], [0, 0, 1, 1], [], []>} : vector<2x32xf32>, vector<32x64xf32>, vector<2x64xf32> -> vector<2x64xf32>
    %cst_125 = arith.constant 0.000000e+00 : f32
    %283 = vector.broadcast %cst_125 : f32 to vector<2x64xf32>
    %284 = arith.maximumf %282, %283 : vector<2x64xf32>
    %cst_126 = arith.constant dense<0.000000e+00> : vector<2x32xf32>
    %285 = tpu.matmul %284, %281, %cst_126 {dimension_numbers = #tpu.dot_dimension_numbers<[1], [0], [0], [1], [0, 0, 1, 1], [], []>} : vector<2x64xf32>, vector<64x32xf32>, vector<2x32xf32> -> vector<2x32xf32>
    %286 = arith.addf %263, %285 : vector<2x32xf32>
    %c6 = arith.constant 6 : index
    %c0_127 = arith.constant 0 : index
    %c0_128 = arith.constant 0 : index
    %287 = vector.load %arg9[%c6, %c0_127, %c0_128] : memref<7x1x32xf32, #tpu.memory_space<vmem>>, vector<1x1x32xf32>
    %288 = vector.shape_cast %287 : vector<1x1x32xf32> to vector<1x32xf32>
    %289 = arith.mulf %286, %286 : vector<2x32xf32>
    %cst_129 = arith.constant dense<0.000000e+00> : vector<2xf32>
    %290 = vector.multi_reduction <add>, %289, %cst_129 [1] : vector<2x32xf32> to vector<2xf32>
    %291 = vector.shape_cast %290 : vector<2xf32> to vector<2x1xf32>
    %cst_130 = arith.constant 3.200000e+01 : f32
    %292 = vector.broadcast %cst_130 : f32 to vector<2x1xf32>
    %293 = arith.divf %291, %292 : vector<2x1xf32>
    %cst_131 = arith.constant 9.99999997E-7 : f32
    %294 = vector.broadcast %cst_131 : f32 to vector<2x1xf32>
    %295 = arith.addf %293, %294 : vector<2x1xf32>
    %296 = math.rsqrt %295 : vector<2x1xf32>
    %297 = vector.broadcast %296 : vector<2x1xf32> to vector<2x32xf32>
    %298 = arith.mulf %286, %297 : vector<2x32xf32>
    %299 = vector.broadcast %288 : vector<1x32xf32> to vector<2x32xf32>
    %300 = arith.mulf %298, %299 : vector<2x32xf32>
    %cst_132 = arith.constant 0.176776692 : f32
    %301 = vector.broadcast %cst_132 : f32 to vector<2x32xf32>
    %302 = arith.mulf %300, %301 : vector<2x32xf32>
    %c0_133 = arith.constant 0 : index
    %c0_134 = arith.constant 0 : index
    %303 = vector.load %arg11[%c0_133, %c0_134] : memref<7x32xf32, #tpu.memory_space<vmem>>, vector<7x32xf32>
    %cst_135 = arith.constant dense<0.000000e+00> : vector<2x7xf32>
    %304 = tpu.matmul %302, %303, %cst_135 {dimension_numbers = #tpu.dot_dimension_numbers<[1], [1], [0], [0], [0, 0, 1, 0], [], []>} : vector<2x32xf32>, vector<7x32xf32>, vector<2x7xf32> -> vector<2x7xf32>
    %c0_136 = arith.constant 0 : index
    %c0_137 = arith.constant 0 : index
    %305 = vector.load %arg13[%c0_136, %c0_137] : memref<2x7xf32, #tpu.memory_space<vmem>>, vector<2x7xf32>
    tpu.vector_store %arg13[%c0_136, %c0_137], %304 {strides = array<i32>} : memref<2x7xf32, #tpu.memory_space<vmem>>, vector<2x7xf32>,
    %cst_138 = arith.constant dense<0xFF800000> : vector<2xf32>
    %306 = vector.multi_reduction <maximumf>, %304, %cst_138 [1] : vector<2x7xf32> to vector<2xf32>
    %307 = vector.shape_cast %306 : vector<2xf32> to vector<2x1xf32>
    %308 = vector.broadcast %307 : vector<2x1xf32> to vector<2x7xf32>
    %309 = arith.subf %304, %308 : vector<2x7xf32>
    %310 = math.exp %309 : vector<2x7xf32>
    %cst_139 = arith.constant dense<0.000000e+00> : vector<2xf32>
    %311 = vector.multi_reduction <add>, %310, %cst_139 [1] : vector<2x7xf32> to vector<2xf32>
    %312 = vector.shape_cast %311 : vector<2xf32> to vector<2x1xf32>
    %313 = math.log %312 : vector<2x1xf32>
    %314 = vector.broadcast %313 : vector<2x1xf32> to vector<2x7xf32>
    %315 = arith.subf %309, %314 : vector<2x7xf32>
    %c0_140 = arith.constant 0 : index
    %c0_141 = arith.constant 0 : index
    %316 = vector.load %arg12[%c0_140, %c0_141] : memref<2x7xf32, #tpu.memory_space<vmem>>, vector<2x7xf32>
    %317 = arith.mulf %315, %316 : vector<2x7xf32>
    %318 = vector.shape_cast %317 : vector<2x7xf32> to vector<1x2x7xf32>
    %cst_142 = arith.constant dense<0.000000e+00> : vector<1xf32>
    %319 = vector.multi_reduction <add>, %318, %cst_142 [1, 2] : vector<1x2x7xf32> to vector<1xf32>
    %320 = vector.shape_cast %319 : vector<1xf32> to vector<1x1x1xf32>
    %321 = vector.extract %320[0, 0, 0] : f32 from vector<1x1x1xf32>
    %cst_143 = arith.constant 0.000000e+00 : f32
    %322 = arith.subf %cst_143, %321 : f32
    %cst_144 = arith.constant 2.000000e+00 : f32
    %323 = arith.divf %322, %cst_144 : f32
    %324 = vector.broadcast %323 : f32 to vector<1x1xf32>
    %c0_145 = arith.constant 0 : index
    %c0_146 = arith.constant 0 : index
    %325 = vector.load %arg14[%c0_145, %c0_146] : memref<1x1xf32, #tpu.memory_space<vmem>>, vector<1x1xf32>
    tpu.vector_store %arg14[%c0_145, %c0_146], %324 {strides = array<i32>} : memref<1x1xf32, #tpu.memory_space<vmem>>, vector<1x1xf32>,
    return
  }
  func.func @transform_0(%arg0: i32) -> (i32, i32) {
    %c0_i32 = arith.constant 0 : i32
    %c0_i32_0 = arith.constant 0 : i32
    %c0_i32_1 = arith.constant 0 : i32
    return %c0_i32, %c0_i32_0 : i32, i32
  }
  func.func @transform_1(%arg0: i32) -> (i32, i32, i32) {
    %c0_i32 = arith.constant 0 : i32
    %c0_i32_0 = arith.constant 0 : i32
    %c0_i32_1 = arith.constant 0 : i32
    %c0_i32_2 = arith.constant 0 : i32
    return %c0_i32, %c0_i32_0, %c0_i32_1 : i32, i32, i32
  }
  func.func @transform_2(%arg0: i32) -> (i32, i32) {
    %c0_i32 = arith.constant 0 : i32
    %c0_i32_0 = arith.constant 0 : i32
    %c0_i32_1 = arith.constant 0 : i32
    return %c0_i32, %c0_i32_0 : i32, i32
  }
  func.func @transform_3(%arg0: i32) -> (i32, i32) {
    %c0_i32 = arith.constant 0 : i32
    %c0_i32_0 = arith.constant 0 : i32
    %c0_i32_1 = arith.constant 0 : i32
    return %c0_i32, %c0_i32_0 : i32, i32
  }
  func.func @transform_4(%arg0: i32) -> (i32, i32) {
    %c0_i32 = arith.constant 0 : i32
    %c0_i32_0 = arith.constant 0 : i32
    %c0_i32_1 = arith.constant 0 : i32
    return %c0_i32, %c0_i32_0 : i32, i32
  }
  func.func @transform_5(%arg0: i32) -> (i32, i32, i32) {
    %c0_i32 = arith.constant 0 : i32
    %c0_i32_0 = arith.constant 0 : i32
    %c0_i32_1 = arith.constant 0 : i32
    %c0_i32_2 = arith.constant 0 : i32
    return %c0_i32, %c0_i32_0, %c0_i32_1 : i32, i32, i32
  }
  func.func @transform_6(%arg0: i32) -> (i32, i32, i32) {
    %c0_i32 = arith.constant 0 : i32
    %c0_i32_0 = arith.constant 0 : i32
    %c0_i32_1 = arith.constant 0 : i32
    %c0_i32_2 = arith.constant 0 : i32
    return %c0_i32, %c0_i32_0, %c0_i32_1 : i32, i32, i32
  }
  func.func @transform_7(%arg0: i32) -> (i32, i32, i32) {
    %c0_i32 = arith.constant 0 : i32
    %c0_i32_0 = arith.constant 0 : i32
    %c0_i32_1 = arith.constant 0 : i32
    %c0_i32_2 = arith.constant 0 : i32
    return %c0_i32, %c0_i32_0, %c0_i32_1 : i32, i32, i32
  }
  func.func @transform_8(%arg0: i32) -> (i32, i32, i32) {
    %c0_i32 = arith.constant 0 : i32
    %c0_i32_0 = arith.constant 0 : i32
    %c0_i32_1 = arith.constant 0 : i32
    %c0_i32_2 = arith.constant 0 : i32
    return %c0_i32, %c0_i32_0, %c0_i32_1 : i32, i32, i32
  }
  func.func @transform_9(%arg0: i32) -> (i32, i32) {
    %c0_i32 = arith.constant 0 : i32
    %c0_i32_0 = arith.constant 0 : i32
    %c0_i32_1 = arith.constant 0 : i32
    return %c0_i32, %c0_i32_0 : i32, i32
  }
  func.func @transform_10(%arg0: i32) -> (i32, i32) {
    %c0_i32 = arith.constant 0 : i32
    %c0_i32_0 = arith.constant 0 : i32
    %c0_i32_1 = arith.constant 0 : i32
    return %c0_i32, %c0_i32_0 : i32, i32
  }
  func.func @transform_11(%arg0: i32) -> (i32, i32) {
    %c0_i32 = arith.constant 0 : i32
    %c0_i32_0 = arith.constant 0 : i32
    %c0_i32_1 = arith.constant 0 : i32
    return %c0_i32, %c0_i32_0 : i32, i32
  }
  func.func @transform_12(%arg0: i32) -> (i32, i32) {
    %c0_i32 = arith.constant 0 : i32
    %c0_i32_0 = arith.constant 0 : i32
    %c0_i32_1 = arith.constant 0 : i32
    return %c0_i32, %c0_i32_0 : i32, i32
  }
  func.func @transform_13(%arg0: i32) -> (i32, i32) {
    %c0_i32 = arith.constant 0 : i32
    %c0_i32_0 = arith.constant 0 : i32
    %c0_i32_1 = arith.constant 0 : i32
    return %c0_i32, %c0_i32_0 : i32, i32
  }
}

</mosaic_0001>

<bundles_post_ra>
// kernel: prompt_t5_cls_forward.1
= control target key start
LH: loop header
LB: loop body
LE: loop exit
PB: predicated region body
PF: predicated region fallthrough
CT: control target
= control target key end

     0   :  { %19 = vsyncpa [#allocation3], 0  ;;  %vm54_vm0 = vcmask 261120   ;;  %s5500_s0 = inlined_call_operand.vmem [shape: f32[30,32], index: 0, kind: input, shape index: {}]   ;;  %s5501_s1 = inlined_call_operand.vmem [shape: f32[4,30,30], index: 1, kind: input, shape index: {}]   ;;  %s5502_s2 = inlined_call_operand.vmem [shape: f32[2,30], index: 2, kind: input, shape index: {}]   ;;  %s5503_s3 = inlined_call_operand.vmem [shape: f32[32,96], index: 3, kind: input, shape index: {}]   ;;  %s5504_s4 = inlined_call_operand.vmem [shape: f32[32,64], index: 4, kind: input, shape index: {}]   ;;  %s5505_s5 = inlined_call_operand.vmem [shape: f32[4,32,32], index: 5, kind: input, shape index: {}]   ;;  %s5506_s6 = inlined_call_operand.vmem [shape: f32[2,32,64], index: 6, kind: input, shape index: {}]   ;;  %s5507_s7 = inlined_call_operand.vmem [shape: f32[2,64,32], index: 7, kind: input, shape index: {}]   ;;  %s5508_s8 = inlined_call_operand.vmem [shape: f32[7,1,32], index: 8, kind: input, shape index: {}]   ;;  %s5509_s9 = inlined_call_operand.vmem [shape: f32[1,32], index: 9, kind: input, shape index: {}]   ;;  %s5510_s10 = inlined_call_operand.vmem [shape: f32[7,32], index: 10, kind: input, shape index: {}]   ;;  %s5511_s11 = inlined_call_operand.vmem [shape: f32[2,7], index: 11, kind: input, shape index: {}]   ;;  %s5512_s12 = inlined_call_operand.hbm [shape: f32[2,7], index: 12, kind: output, shape index: {0}]   ;;  %s5513_s13 = inlined_call_operand.hbm [shape: f32[1,1], index: 13, kind: output, shape index: {1}]  }
   0x1   :  { %v45_v0 = vld [vmem:[%s5500_s0] sm:$0xff]  ;;  %v47_v1 = vld [vmem:[%s5500_s0 + $0x10] sm:$0xff]  ;;  %v46_v2 = vld [vmem:[%s5500_s0 + $0x8] sm:$0xff] }
   0x2   :  { %v50_v3 = vmul.f32 %v45_v0, %v45_v0  ;;  %v52_v4 = vmul.f32 %v47_v1, %v47_v1  ;;  %v51_v5 = vmul.f32 %v46_v2, %v46_v2  ;;  %v48_v6 = vld [vmem:[%s5500_s0 + $0x18] sm:$0x3f] }
   0x3   :  { %20 = vsyncpa [#allocation5], 0  ;;  %v53_v7 = vmul.f32 %v48_v6, %v48_v6  ;;  %vm64_vm1 = vcmask 259072   ;;  %v98_v12 = vld [vmem:[%s5503_s3 + $0x18] sm:$0xff]  ;;  %v97_v13 = vld [vmem:[%s5503_s3 + $0x10] sm:$0xff]  ;;  %vm216_vm2 = vcmask 64512  }
   0x4   :  { %v55_v8 = vsel %vm54_vm0, %v50_v3, 0.0  ;;  %v61_v9 = vsel %vm54_vm0, %v52_v4, 0.0  ;;  %v58_v10 = vsel %vm54_vm0, %v51_v5, 0.0  ;;  %4058 = vmatprep.subr.mxu0 %v98_v12  ;;  %v96_v14 = vld [vmem:[%s5503_s3 + $0x8] sm:$0xff]  ;;  %v95_v15 = vld [vmem:[%s5503_s3] sm:$0xff]  ;;  %s4612_s25 = smov 96  }
   0x5   :  { %56 = vadd.xlane.f32.xlu0 %v55_v8  ;;  %62 = vadd.xlane.f32.xlu1 %v61_v9  ;;  %v65_v11 = vsel %vm64_vm1, %v53_v7, 0.0  ;;  %v3695_v29 = vld [vmem:[%s5508_s8] ss:$0 sm:$0xff]  ;;  %v201_v49 = vld [vmem:[%s5501_s1 + $0x8] sm:$0xff]  ;;  %vm318_vm3 = vcmask 244736   ;;  %v202_v61 = vld [vmem:[%s5501_s1 + $0x10] sm:$0xff] }
   0x6   :  { %4059 = vmatpush3.msra.mxu0 %v98_v12  ;;  %v200_v51 = vld [vmem:[%s5501_s1] sm:$0xff]  ;;  %v203_v54 = vld [vmem:[%s5501_s1 + $0x18] sm:$0x3f]  ;;  %vm328_vm4 = vcmask 242688   ;;  %s4613_s17 = smov 64   ;;  %vm387_vm5 = vcmask 1045504  }
   0x7   :  { %4060 = vmatprep.subr.mxu0 %v97_v13  ;;  %s4614_s18 = smov 88   ;;  %s4615_s19 = smov 120   ;;  %vm2010_vm6 = vcmask 253952   ;;  %vm4624_vm7 = vmmov 0   ;;  %vm1860_vm8 = vcmask 523264   ;;  %vm2384_vm9 = vcmask 238592  }
   0x8   :  { %4061 = vmatpush3.msra.mxu0 %v97_v13  ;;  %s4616_s30 = smov 56   ;;  %s4617_s14 = smov 80   ;;  %vm3362_vm10 = vcmask 254976   ;;  %vm3634_vm11 = vcmask 50176  }
   0x9   :  { %59 = vadd.xlane.f32.xlu0 %v58_v10  ;;  %66 = vadd.xlane.f32.xlu1 %v65_v11  ;;  %s4618_s15 = smov 112   ;;  %s4619_s16 = smov 72  }
   0xa   :  { %4062 = vmatprep.subr.mxu0 %v96_v14  ;;  %s4622_s29 = smov 40   ;;  %s4625_s22 = smov [#allocation2]  }
   0xb   :  { %4063 = vmatpush3.msra.mxu0 %v96_v14  ;;  %s3673_s23 = sshll.u32 %s4625_s22, 4  ;;  %s3674_s23 = int_to_ptr.vmem [resolvable:$true] %s3673_s23 }
   0xc   :  { %4064 = vmatprep.subr.mxu0 %v95_v15  ;;  %p4573_p1 = scmp.lt.s32.totalorder %s3674_s23, %s3674_s23 }
   0xd   :  { %4065 = vmatpush3.msra.mxu0 %v95_v15 }
  0x8e   :  { %v57_v16 = vpop.xlane.xlu0 %56  ;;  %v63_v17 = vpop.xlane.xlu1 %62 }
  0x8f   :  { %v69_v18 = vmul.f32 0.03125, %v57_v16  ;;  %v71_v19 = vmul.f32 0.03125, %v63_v17 }
  0x91   :  { %v73_v20 = vadd.f32 1e-06, %v69_v18  ;;  %v75_v21 = vadd.f32 1e-06, %v71_v19 }
  0x92   :  { %v60_v22 = vpop.xlane.xlu0 %59  ;;  %v67_v23 = vpop.xlane.xlu1 %66 }
  0x93   :  { %4448 = vrsqrt.f32 %v73_v20  ;;  %v70_v24 = vmul.f32 0.03125, %v60_v22  ;;  %v72_v25 = vmul.f32 0.03125, %v67_v23 }
  0x94   :  { %4450 = vrsqrt.f32 %v75_v21 }
  0x95   :  { %v74_v26 = vadd.f32 1e-06, %v70_v24  ;;  %v76_v27 = vadd.f32 1e-06, %v72_v25 }
  0x97   :  { %4452 = vrsqrt.f32 %v74_v26 }
  0x98   :  { %4454 = vrsqrt.f32 %v76_v27 }
  0xa0   :  { %v4449_v28 = vpop.eup %4448 }
  0xa1   :  { %v4451_v30 = vpop.eup %4450  ;;  %v81_v31 = vmul.f32 %v4449_v28, %v45_v0 }
  0xa2   :  { %v83_v32 = vmul.f32 %v4451_v30, %v47_v1 }
  0xa3   :  { %v91_v33 = vmul.f32 %v3695_v29, %v81_v31 }
  0xa4   :  { %v4453_v34 = vpop.eup %4452  ;;  %v93_v37 = vmul.f32 %v3695_v29, %v83_v32 }
  0xa5   :  { %v4455_v35 = vpop.eup %4454  ;;  %4066 = vmatprep.mubr.msk.f32.mxu0 %vm54_vm0, %v91_v33  ;;  %v82_v36 = vmul.f32 %v4453_v34, %v46_v2 }
  0xa6   :  { %v84_v38 = vmul.f32 %v4455_v35, %v48_v6 }
  0xa7   :  { %v92_v39 = vmul.f32 %v3695_v29, %v82_v36 }
  0xa8   :  { %v94_v40 = vmul.f32 %v3695_v29, %v84_v38 }
  0xa9   :  { %4067 = vmatmul.mubr.msk.f32.vlgmr.msra.gmra.mxu0 %vm54_vm0, %v92_v39 }
  0xaa   :  { %4069 = vmatprep.mubr.msk.f32.mxu0 %vm54_vm0, %v93_v37 }
  0xad   :  { %4070 = vmatmul.mubr.msk.f32.gmra.mxu0 %vm54_vm0, %v94_v40 }
 0x169   :  { %v4732_v41 = vpop.f32.mrf.mxu0 }
 0x16b   :  { %v4734_v42 = vpop.f32.mrf.mxu0 }
 0x16c   :  { %4080 = vmatprep.mubr.msk.f32.mxu1 %vm216_vm2, %v4734_v42 }
 0x16d   :  { %v4738_v43 = vpop.f32.mrf.mxu0 }
 0x16e   :  { %214 = vrot.lane.b32.xlu0 %v4738_v43, %s4612_s25 }
 0x16f   :  { %v4742_v44 = vpop.f32.mrf.mxu0 }
 0x170   :  { %212 = vrot.lane.b32.xlu1 %v4742_v44, %s4612_s25 }
 0x174   :  { %210 = vrot.lane.b32.xlu1 %v4732_v41, %s4612_s25 }
 0x178   :  { %208 = vrot.lane.b32.xlu1 %v4734_v42, %s4612_s25 }
 0x1e0   :  { %v215_v45 = vpop.permute.xlu0 %214 }
 0x1e1   :  { %4072 = vmatprep.subr.msk.mxu1 %vm216_vm2, %v215_v45 }
 0x1e2   :  { %4073 = vmatpush3.xpose.msk.msra.mxu1 %vm216_vm2, %v215_v45  ;;  %v213_v46 = vpop.permute.xlu1 %212 }
 0x1e3   :  { %4074 = vmatprep.subr.msk.mxu1 %vm216_vm2, %v213_v46 }
 0x1e6   :  { %4075 = vmatpush3.xpose.msk.msra.mxu1 %vm216_vm2, %v213_v46  ;;  %v211_v47 = vpop.permute.xlu1 %210 }
 0x1e7   :  { %4076 = vmatprep.subr.msk.mxu1 %vm216_vm2, %v211_v47 }
 0x1ea   :  { %4077 = vmatpush3.xpose.msk.msra.mxu1 %vm216_vm2, %v211_v47  ;;  %v209_v48 = vpop.permute.xlu1 %208 }
 0x1eb   :  { %4078 = vmatprep.subr.msk.mxu1 %vm216_vm2, %v209_v48 }
 0x1ee   :  { %4079 = vmatpush3.xpose.msk.msra.mxu1 %vm216_vm2, %v209_v48 }
 0x1f1   :  { %4081 = vmatmul.mubr.msk.f32.vlgmr.msra.gmra.mxu1 %vm216_vm2, %v4732_v41 }
 0x1f2   :  { %4083 = vmatprep.mubr.msk.f32.mxu1 %vm216_vm2, %v4742_v44 }
 0x1f5   :  { %4084 = vmatmul.mubr.msk.f32.gmra.mxu1 %vm216_vm2, %v4738_v43 }
 0x2b1   :  { %v4082_v50 = vpop.f32.mrf.mxu1 }
 0x2b2   :  { %v305_v52 = vadd.f32 %v4082_v50, %v201_v49  ;;  %v196_v49 = vld [vmem:[%s5505_s5] sm:$0xff] }
 0x2b3   :  { %v299_v53 = vpop.f32.mrf.mxu1 }
 0x2b4   :  { %v300_v55 = vadd.f32 %v299_v53, %v200_v51  ;;  %v322_v56 = vsel %vm318_vm3, %v305_v52, -inf }
 0x2b5   :  { %323 = vmax.xlane.f32.xlu1 %v322_v56  ;;  %v4085_v57 = vpop.f32.mrf.mxu1  ;;  %v3713_v56 = vld [vmem:[%s5501_s1 + $0x20] sm:$0xff] }
 0x2b6   :  { %v315_v58 = vadd.f32 %v4085_v57, %v203_v54  ;;  %v319_v59 = vsel %vm318_vm3, %v300_v55, -inf  ;;  %v3714_v54 = vld [vmem:[%s5501_s1 + $0x28] sm:$0xff] }
 0x2b7   :  { %v309_v60 = vpop.f32.mrf.mxu1  ;;  %320 = vmax.xlane.f32.xlu0 %v319_v59 }
 0x2b8   :  { %v310_v62 = vadd.f32 %v309_v60, %v202_v61  ;;  %v329_v63 = vsel %vm328_vm4, %v315_v58, -inf }
 0x2ba   :  { %v325_v0 = vsel %vm318_vm3, %v310_v62, -inf }
 0x2bb   :  { %330 = vmax.xlane.f32.xlu0 %v329_v63 }
 0x2bf   :  { %326 = vmax.xlane.f32.xlu0 %v325_v0  ;;  %v3716_v0 = vld [vmem:[%s5501_s1 + $0x38] sm:$0x3f] }
 0x2c6   :  { %368 = vrot.lane.b32.xlu1 %v4742_v44, %s4613_s17 }
 0x2ca   :  { %366 = vrot.lane.b32.xlu1 %v4732_v41, %s4613_s17 }
 0x2ce   :  { %364 = vrot.lane.b32.xlu1 %v4734_v42, %s4613_s17 }
 0x2d5   :  { %370 = vrot.lane.b32.xlu0 %v4738_v43, %s4613_s17  ;;  %s4620_s17 = smov 104  }
 0x33e   :  { %v324_v1 = vpop.xlane.xlu1 %323 }
 0x33f   :  { %v333_v2 = vsub.f32 %v305_v52, %v324_v1 }
 0x340   :  { %v321_v3 = vpop.xlane.xlu0 %320 }
 0x341   :  { %v338_v4 = vmul.f32 1.442695, %v333_v2  ;;  %v332_v5 = vsub.f32 %v300_v55, %v321_v3 }
 0x342   :  { %v369_v8 = vpop.permute.xlu1 %368 }
 0x343   :  { %4456 = vpow2.f32 %v338_v4  ;;  %v336_v6 = vmul.f32 1.442695, %v332_v5 }
 0x344   :  { %v331_v7 = vpop.xlane.xlu0 %330 }
 0x345   :  { %4458 = vpow2.f32 %v336_v6  ;;  %v335_v17 = vsub.f32 %v315_v58, %v331_v7 }
 0x346   :  { %v367_v10 = vpop.permute.xlu1 %366 }
 0x347   :  { %v342_v19 = vmul.f32 1.442695, %v335_v17 }
 0x348   :  { %v327_v9 = vpop.xlane.xlu0 %326 }
 0x349   :  { %v334_v18 = vsub.f32 %v310_v62, %v327_v9  ;;  %4460 = vpow2.f32 %v342_v19  ;;  %v3715_v62 = vld [vmem:[%s5501_s1 + $0x30] sm:$0xff] }
 0x34a   :  { %v365_v15 = vpop.permute.xlu1 %364 }
 0x34b   :  { %v340_v20 = vmul.f32 1.442695, %v334_v18 }
 0x34c   :  { %v371_v11 = vpop.permute.xlu0 %370 }
 0x34d   :  { %4086 = vmatprep.subr.msk.mxu0 %vm387_vm5, %v371_v11  ;;  %4462 = vpow2.f32 %v340_v20 }
 0x34e   :  { %4087 = vmatpush3.msk.msra.mxu0 %vm387_vm5, %v371_v11 }
 0x34f   :  { %4088 = vmatprep.subr.mxu0 %v369_v8 }
 0x350   :  { %v4457_v12 = vpop.eup %4456  ;;  %4089 = vmatpush3.msra.mxu0 %v369_v8 }
 0x351   :  { %4090 = vmatprep.subr.mxu0 %v367_v10  ;;  %v347_v13 = vsel %vm318_vm3, %v4457_v12, 0.0 }
 0x352   :  { %v4459_v14 = vpop.eup %4458  ;;  %348 = vadd.xlane.f32.xlu1 %v347_v13  ;;  %4091 = vmatpush3.msra.mxu0 %v367_v10 }
 0x353   :  { %4092 = vmatprep.subr.mxu0 %v365_v15  ;;  %v344_v16 = vsel %vm318_vm3, %v4459_v14, 0.0 }
 0x354   :  { %345 = vadd.xlane.f32.xlu0 %v344_v16  ;;  %4093 = vmatpush3.msra.mxu0 %v365_v15 }
 0x356   :  { %v4461_v21 = vpop.eup %4460 }
 0x357   :  { %v353_v23 = vsel %vm328_vm4, %v4461_v21, 0.0 }
 0x35a   :  { %v4463_v22 = vpop.eup %4462 }
 0x35b   :  { %v350_v24 = vsel %vm318_vm3, %v4463_v22, 0.0 }
 0x363   :  { %492 = vrot.lane.b32.xlu1 %v4742_v44, %s4614_s18 }
 0x36a   :  { %494 = vrot.lane.b32.xlu0 %v4738_v43, %s4614_s18 }
 0x387   :  { %354 = vadd.xlane.f32.xlu1 %v353_v23 }
 0x389   :  { %351 = vadd.xlane.f32.xlu0 %v350_v24 }
 0x398   :  { %488 = vrot.lane.b32.xlu1 %v4734_v42, %s4614_s18 }
 0x39c   :  { %482 = vrot.lane.b32.xlu1 %v4732_v41, %s4615_s19 }
 0x39f   :  { %490 = vrot.lane.b32.xlu0 %v4732_v41, %s4614_s18 }
 0x3a0   :  { %486 = vrot.lane.b32.xlu1 %v4738_v43, %s4615_s19 }
 0x3a3   :  { %480 = vrot.lane.b32.xlu0 %v4734_v42, %s4615_s19 }
 0x3a7   :  { %484 = vrot.lane.b32.xlu0 %v4742_v44, %s4615_s19 }
 0x3db   :  { %v349_v25 = vpop.xlane.xlu1 %348 }
 0x3dc   :  { %4464 = vrcp.f32 %v349_v25 }
 0x3dd   :  { %v346_v26 = vpop.xlane.xlu0 %345 }
 0x3de   :  { %4466 = vrcp.f32 %v346_v26 }
 0x3df   :  { %v493_v32 = vpop.permute.xlu1 %492 }
 0x3e1   :  { %v495_v27 = vpop.permute.xlu0 %494 }
 0x3e2   :  { %4100 = vmatprep.subr.msk.mxu0 %vm216_vm2, %v495_v27 }
 0x3e9   :  { %v4465_v28 = vpop.eup %4464 }
 0x3ea   :  { %v361_v31 = vmul.f32 %v4465_v28, %v4457_v12 }
 0x3eb   :  { %v4467_v29 = vpop.eup %4466 }
 0x3ec   :  { %v360_v30 = vmul.f32 %v4467_v29, %v4459_v14 }
 0x3ee   :  { %4094 = vmatprep.mubr.msk.f32.mxu0 %vm318_vm3, %v360_v30 }
 0x3ef   :  { %4095 = vmatmul.mubr.msk.f32.vlgmr.msra.gmra.mxu0 %vm318_vm3, %v361_v31 }
 0x3f0   :  { %4101 = vmatpush3.xpose.msk.msra.mxu0 %vm216_vm2, %v495_v27 }
 0x3f1   :  { %4102 = vmatprep.subr.msk.mxu0 %vm216_vm2, %v493_v32 }
 0x3f4   :  { %4103 = vmatpush3.xpose.msk.msra.mxu0 %vm216_vm2, %v493_v32 }
 0x410   :  { %v355_v33 = vpop.xlane.xlu1 %354 }
 0x411   :  { %4468 = vrcp.f32 %v355_v33 }
 0x412   :  { %v352_v34 = vpop.xlane.xlu0 %351 }
 0x413   :  { %4470 = vrcp.f32 %v352_v34 }
 0x414   :  { %v489_v36 = vpop.permute.xlu1 %488 }
 0x416   :  { %v491_v35 = vpop.permute.xlu0 %490 }
 0x417   :  { %4104 = vmatprep.subr.msk.mxu0 %vm216_vm2, %v491_v35 }
 0x418   :  { %4105 = vmatpush3.xpose.msk.msra.mxu0 %vm216_vm2, %v491_v35  ;;  %v483_v46 = vpop.permute.xlu1 %482 }
 0x419   :  { %4106 = vmatprep.subr.msk.mxu0 %vm216_vm2, %v489_v36 }
 0x41a   :  { %v481_v40 = vpop.permute.xlu0 %480 }
 0x41c   :  { %4107 = vmatpush3.xpose.msk.msra.mxu0 %vm216_vm2, %v489_v36  ;;  %v487_v48 = vpop.permute.xlu1 %486 }
 0x41d   :  { %4136 = vmatprep.subr.mxu0 %v196_v49 }
 0x41e   :  { %v4469_v37 = vpop.eup %4468  ;;  %v485_v47 = vpop.permute.xlu0 %484 }
 0x41f   :  { %v363_v45 = vmul.f32 %v4469_v37, %v4461_v21 }
 0x420   :  { %v4471_v38 = vpop.eup %4470 }
 0x421   :  { %v362_v39 = vmul.f32 %v4471_v38, %v4463_v22  ;;  %v197_v38 = vld [vmem:[%s5505_s5 + $0x8] sm:$0xff] }
 0x423   :  { %4097 = vmatprep.mubr.msk.f32.mxu0 %vm318_vm3, %v362_v39 }
 0x424   :  { %4098 = vmatmul.mubr.msk.f32.gmra.mxu0 %vm318_vm3, %v363_v45 }
 0x425   :  { %4108 = vmatprep.mubr.msk.f32.mxu0 %vm216_vm2, %v481_v40 }
 0x428   :  { %4109 = vmatmul.mubr.msk.f32.vlgmr.msra.gmra.mxu0 %vm216_vm2, %v483_v46 }
 0x429   :  { %4111 = vmatprep.mubr.msk.f32.mxu0 %vm216_vm2, %v485_v47  ;;  %4137 = vmatpush3.msra.mxu0 %v196_v49 }
 0x42c   :  { %4112 = vmatmul.mubr.msk.f32.gmra.mxu0 %vm216_vm2, %v487_v48 }
 0x4af   :  { %v4096_v50 = vpop.f32.mrf.mxu0 }
 0x4b1   :  { %v456_v51 = vpop.f32.mrf.mxu0 }
 0x4b2   :  { %4138 = vmatprep.mubr.msk.f32.mxu0 %vm216_vm2, %v456_v51 }
 0x4b3   :  { %4139 = vmatmul.mubr.msk.f32.vlgmr.msra.gmra.mxu0 %vm216_vm2, %v4096_v50 }
 0x4e4   :  { %v4099_v52 = vpop.f32.mrf.mxu0 }
 0x4e6   :  { %v466_v53 = vpop.f32.mrf.mxu0 }
 0x4e7   :  { %4141 = vmatprep.mubr.msk.f32.mxu0 %vm216_vm2, %v466_v53 }
 0x4e8   :  { %v4110_v55 = vpop.f32.mrf.mxu0  ;;  %4142 = vmatmul.mubr.msk.f32.gmra.mxu0 %vm216_vm2, %v4099_v52 }
 0x4e9   :  { %v584_v57 = vadd.f32 %v4110_v55, %v3714_v54 }
 0x4ea   :  { %v578_v58 = vpop.f32.mrf.mxu0 }
 0x4eb   :  { %v579_v59 = vadd.f32 %v3713_v56, %v578_v58  ;;  %v600_v60 = vsel %vm318_vm3, %v584_v57, -inf }
 0x4ec   :  { %601 = vmax.xlane.f32.xlu1 %v600_v60  ;;  %v4113_v61 = vpop.f32.mrf.mxu0 }
 0x4ed   :  { %v597_v63 = vsel %vm318_vm3, %v579_v59, -inf  ;;  %v594_v3 = vadd.f32 %v4113_v61, %v3716_v0 }
 0x4ee   :  { %598 = vmax.xlane.f32.xlu0 %v597_v63  ;;  %v588_v1 = vpop.f32.mrf.mxu0 }
 0x4ef   :  { %v589_v2 = vadd.f32 %v3715_v62, %v588_v1  ;;  %v606_v5 = vsel %vm328_vm4, %v594_v3, -inf }
 0x4f1   :  { %v603_v4 = vsel %vm318_vm3, %v589_v2, -inf }
 0x4f2   :  { %604 = vmax.xlane.f32.xlu0 %v603_v4 }
 0x4f6   :  { %607 = vmax.xlane.f32.xlu0 %v606_v5 }
 0x575   :  { %v602_v6 = vpop.xlane.xlu1 %601 }
 0x576   :  { %v610_v7 = vsub.f32 %v584_v57, %v602_v6 }
 0x577   :  { %v599_v8 = vpop.xlane.xlu0 %598 }
 0x578   :  { %v615_v9 = vmul.f32 1.442695, %v610_v7  ;;  %v609_v10 = vsub.f32 %v579_v59, %v599_v8  ;;  %v3739_v7 = vld [vmem:[%s5501_s1 + $0x48] sm:$0xff] }
 0x57a   :  { %4472 = vpow2.f32 %v615_v9  ;;  %v613_v11 = vmul.f32 1.442695, %v609_v10  ;;  %v3738_v9 = vld [vmem:[%s5501_s1 + $0x40] sm:$0xff] }
 0x57b   :  { %v605_v12 = vpop.xlane.xlu0 %604 }
 0x57c   :  { %4474 = vpow2.f32 %v613_v11  ;;  %v611_v13 = vsub.f32 %v589_v2, %v605_v12 }
 0x57e   :  { %v617_v14 = vmul.f32 1.442695, %v611_v13 }
 0x57f   :  { %v608_v15 = vpop.xlane.xlu0 %607 }
 0x580   :  { %4476 = vpow2.f32 %v617_v14  ;;  %v612_v16 = vsub.f32 %v594_v3, %v608_v15  ;;  %v3740_v15 = vld [vmem:[%s5501_s1 + $0x50] sm:$0xff] }
 0x582   :  { %v619_v17 = vmul.f32 1.442695, %v612_v16 }
 0x584   :  { %4478 = vpow2.f32 %v619_v17  ;;  %v3741_v17 = vld [vmem:[%s5501_s1 + $0x58] sm:$0x3f] }
 0x587   :  { %v4473_v18 = vpop.eup %4472 }
 0x588   :  { %v624_v19 = vsel %vm318_vm3, %v4473_v18, 0.0 }
 0x589   :  { %v4475_v20 = vpop.eup %4474  ;;  %625 = vadd.xlane.f32.xlu1 %v624_v19 }
 0x58a   :  { %v621_v21 = vsel %vm318_vm3, %v4475_v20, 0.0 }
 0x58b   :  { %622 = vadd.xlane.f32.xlu0 %v621_v21 }
 0x58d   :  { %v4477_v22 = vpop.eup %4476 }
 0x58e   :  { %v627_v23 = vsel %vm318_vm3, %v4477_v22, 0.0 }
 0x58f   :  { %628 = vadd.xlane.f32.xlu0 %v627_v23 }
 0x591   :  { %v4848_v24 = vpop.eup %4478 }
 0x592   :  { %v630_v25 = vsel %vm328_vm4, %v4848_v24, 0.0 }
 0x593   :  { %631 = vadd.xlane.f32.xlu1 %v630_v25 }
 0x5a4   :  { %645 = vrot.lane.b32.xlu1 %v4742_v44, %s4616_s30 }
 0x5a5   :  { %647 = vrot.lane.b32.xlu0 %v4738_v43, %s4616_s30 }
 0x5a8   :  { %643 = vrot.lane.b32.xlu1 %v4732_v41, %s4616_s30 }
 0x5a9   :  { %964 = vrot.lane.b32.xlu0 %v4738_v43, %s4617_s14 }
 0x5ac   :  { %641 = vrot.lane.b32.xlu1 %v4734_v42, %s4616_s30  ;;  %s4621_s30 = smov 48  }
 0x5ad   :  { %960 = vrot.lane.b32.xlu0 %v4732_v41, %s4617_s14 }
 0x5b0   :  { %962 = vrot.lane.b32.xlu1 %v4742_v44, %s4617_s14 }
 0x5b1   :  { %950 = vrot.lane.b32.xlu0 %v4734_v42, %s4618_s15 }
 0x5b4   :  { %958 = vrot.lane.b32.xlu1 %v4734_v42, %s4617_s14 }
 0x5b5   :  { %954 = vrot.lane.b32.xlu0 %v4742_v44, %s4618_s15 }
 0x5b8   :  { %952 = vrot.lane.b32.xlu1 %v4732_v41, %s4618_s15 }
 0x5b9   :  { %1341 = vrot.lane.b32.xlu0 %v4738_v43, %s4619_s16 }
 0x5bc   :  { %956 = vrot.lane.b32.xlu1 %v4738_v43, %s4618_s15 }
 0x5bd   :  { %1337 = vrot.lane.b32.xlu0 %v4732_v41, %s4619_s16 }
 0x5c0   :  { %1339 = vrot.lane.b32.xlu1 %v4742_v44, %s4619_s16 }
 0x5c1   :  { %1327 = vrot.lane.b32.xlu0 %v4734_v42, %s4620_s17 }
 0x5c4   :  { %1335 = vrot.lane.b32.xlu1 %v4734_v42, %s4619_s16 }
 0x5c5   :  { %1331 = vrot.lane.b32.xlu0 %v4742_v44, %s4620_s17 }
 0x5c8   :  { %1329 = vrot.lane.b32.xlu1 %v4732_v41, %s4620_s17 }
 0x5cc   :  { %1333 = vrot.lane.b32.xlu1 %v4738_v43, %s4620_s17 }
 0x612   :  { %v626_v27 = vpop.xlane.xlu1 %625 }
 0x614   :  { %v623_v26 = vpop.xlane.xlu0 %622 }
 0x615   :  { %4480 = vrcp.f32 %v623_v26 }
 0x616   :  { %4482 = vrcp.f32 %v626_v27 }
 0x618   :  { %v629_v28 = vpop.xlane.xlu0 %628 }
 0x619   :  { %4484 = vrcp.f32 %v629_v28 }
 0x61c   :  { %v632_v29 = vpop.xlane.xlu1 %631  ;;  %v648_v30 = vpop.permute.xlu0 %647 }
 0x61d   :  { %4486 = vrcp.f32 %v632_v29  ;;  %4114 = vmatprep.subr.msk.mxu1 %vm387_vm5, %v648_v30 }
 0x61e   :  { %4115 = vmatpush3.msk.msra.mxu1 %vm387_vm5, %v648_v30 }
 0x620   :  { %v646_v31 = vpop.permute.xlu1 %645  ;;  %v965_v46 = vpop.permute.xlu0 %964 }
 0x621   :  { %4116 = vmatprep.subr.mxu1 %v646_v31 }
 0x622   :  { %v4481_v32 = vpop.eup %4480  ;;  %4117 = vmatpush3.msra.mxu1 %v646_v31 }
 0x623   :  { %v637_v33 = vmul.f32 %v4481_v32, %v4475_v20  ;;  %v4483_v35 = vpop.eup %4482 }
 0x624   :  { %v644_v34 = vpop.permute.xlu1 %643  ;;  %v638_v39 = vmul.f32 %v4483_v35, %v4473_v18  ;;  %v961_v48 = vpop.permute.xlu0 %960 }
 0x625   :  { %4118 = vmatprep.subr.mxu1 %v644_v34  ;;  %4122 = vmatprep.mubr.msk.f32.mxu1 %vm318_vm3, %v637_v33 }
 0x626   :  { %4119 = vmatpush3.msra.mxu1 %v644_v34  ;;  %v4485_v36 = vpop.eup %4484 }
 0x627   :  { %v639_v45 = vmul.f32 %v4485_v36, %v4477_v22 }
 0x628   :  { %v642_v37 = vpop.permute.xlu1 %641  ;;  %v951_v50 = vpop.permute.xlu0 %950 }
 0x629   :  { %4120 = vmatprep.subr.mxu1 %v642_v37 }
 0x62a   :  { %v4487_v40 = vpop.eup %4486  ;;  %4121 = vmatpush3.msra.mxu1 %v642_v37 }
 0x62b   :  { %4123 = vmatmul.mubr.msk.f32.vlgmr.msra.gmra.mxu1 %vm318_vm3, %v638_v39  ;;  %4128 = vmatprep.subr.mxu1 %v197_v38  ;;  %v640_v47 = vmul.f32 %v4487_v40, %v4848_v24 }
 0x62c   :  { %4125 = vmatprep.mubr.msk.f32.mxu1 %vm318_vm3, %v639_v45  ;;  %4129 = vmatpush3.msra.mxu1 %v197_v38  ;;  %v963_v49 = vpop.permute.xlu1 %962  ;;  %v955_v55 = vpop.permute.xlu0 %954 }
 0x62d   :  { %4144 = vmatprep.subr.msk.mxu1 %vm216_vm2, %v965_v46 }
 0x62f   :  { %4126 = vmatmul.mubr.msk.f32.gmra.mxu1 %vm318_vm3, %v640_v47 }
 0x630   :  { %v959_v53 = vpop.permute.xlu1 %958  ;;  %v1342_v58 = vpop.permute.xlu0 %1341 }
 0x634   :  { %v953_v57 = vpop.permute.xlu1 %952  ;;  %v1338_v60 = vpop.permute.xlu0 %1337 }
 0x638   :  { %v957_v59 = vpop.permute.xlu1 %956  ;;  %v1328_v62 = vpop.permute.xlu0 %1327 }
 0x63c   :  { %v1340_v61 = vpop.permute.xlu1 %1339  ;;  %v1332_v1 = vpop.permute.xlu0 %1331 }
 0x640   :  { %v1336_v63 = vpop.permute.xlu1 %1335 }
 0x644   :  { %v1330_v0 = vpop.permute.xlu1 %1329 }
 0x648   :  { %v1334_v2 = vpop.permute.xlu1 %1333 }
 0x6eb   :  { %v4124_v51 = vpop.f32.mrf.mxu1 }
 0x6ed   :  { %v732_v52 = vpop.f32.mrf.mxu1 }
 0x6ee   :  { %4130 = vmatprep.mubr.msk.f32.mxu1 %vm216_vm2, %v732_v52 }
 0x6ef   :  { %v4127_v54 = vpop.f32.mrf.mxu1  ;;  %4131 = vmatmul.mubr.msk.f32.vlgmr.msra.gmra.mxu1 %vm216_vm2, %v4124_v51 }
 0x6f0   :  { %4145 = vmatpush3.xpose.msk.msra.mxu1 %vm216_vm2, %v965_v46 }
 0x6f1   :  { %4146 = vmatprep.subr.msk.mxu1 %vm216_vm2, %v963_v49  ;;  %v742_v56 = vpop.f32.mrf.mxu1 }
 0x6f2   :  { %4133 = vmatprep.mubr.msk.f32.mxu1 %vm216_vm2, %v742_v56  ;;  %v3762_v56 = vld [vmem:[%s5501_s1 + $0x78] sm:$0x3f] }
 0x6f3   :  { %4134 = vmatmul.mubr.msk.f32.gmra.mxu1 %vm216_vm2, %v4127_v54 }
 0x6f4   :  { %4147 = vmatpush3.xpose.msk.msra.mxu1 %vm216_vm2, %v963_v49  ;;  %4152 = vmatprep.mubr.msk.f32.mxu1 %vm216_vm2, %v951_v50  ;;  %v3759_v49 = vld [vmem:[%s5501_s1 + $0x60] sm:$0xff] }
 0x6f5   :  { %4148 = vmatprep.subr.msk.mxu1 %vm216_vm2, %v961_v48 }
 0x6f8   :  { %4149 = vmatpush3.xpose.msk.msra.mxu1 %vm216_vm2, %v961_v48 }
 0x6f9   :  { %4150 = vmatprep.subr.msk.mxu1 %vm216_vm2, %v959_v53 }
 0x6fc   :  { %4151 = vmatpush3.xpose.msk.msra.mxu1 %vm216_vm2, %v959_v53  ;;  %v3761_v53 = vld [vmem:[%s5501_s1 + $0x70] sm:$0xff] }
 0x6fd   :  { %4180 = vmatprep.subr.msk.mxu1 %vm216_vm2, %v1342_v58 }
 0x6ff   :  { %4153 = vmatmul.mubr.msk.f32.vlgmr.msra.gmra.mxu1 %vm216_vm2, %v953_v57 }
 0x700   :  { %4155 = vmatprep.mubr.msk.f32.mxu1 %vm216_vm2, %v955_v55  ;;  %4181 = vmatpush3.xpose.msk.msra.mxu1 %vm216_vm2, %v1342_v58 }
 0x701   :  { %4182 = vmatprep.subr.msk.mxu1 %vm216_vm2, %v1340_v61 }
 0x703   :  { %4156 = vmatmul.mubr.msk.f32.gmra.mxu1 %vm216_vm2, %v957_v59  ;;  %v3760_v59 = vld [vmem:[%s5501_s1 + $0x68] sm:$0xff] }
 0x704   :  { %4183 = vmatpush3.xpose.msk.msra.mxu1 %vm216_vm2, %v1340_v61  ;;  %4188 = vmatprep.mubr.msk.f32.mxu1 %vm216_vm2, %v1328_v62 }
 0x705   :  { %4184 = vmatprep.subr.msk.mxu1 %vm216_vm2, %v1338_v60 }
 0x708   :  { %4185 = vmatpush3.xpose.msk.msra.mxu1 %vm216_vm2, %v1338_v60 }
 0x709   :  { %4186 = vmatprep.subr.msk.mxu1 %vm216_vm2, %v1336_v63 }
 0x70c   :  { %4187 = vmatpush3.xpose.msk.msra.mxu1 %vm216_vm2, %v1336_v63 }
 0x70f   :  { %4189 = vmatmul.mubr.msk.f32.vlgmr.msra.gmra.mxu1 %vm216_vm2, %v1330_v0 }
 0x710   :  { %4191 = vmatprep.mubr.msk.f32.mxu1 %vm216_vm2, %v1332_v1 }
 0x713   :  { %4192 = vmatmul.mubr.msk.f32.gmra.mxu1 %vm216_vm2, %v1334_v2 }
 0x7af   :  { %v4926_v3 = vpop.f32.mrf.mxu1 }
 0x7b1   :  { %v4928_v4 = vpop.f32.mrf.mxu1 }
 0x7b3   :  { %v4930_v5 = vpop.f32.mrf.mxu1 }
 0x7b5   :  { %v4932_v6 = vpop.f32.mrf.mxu1 }
 0x7bf   :  { %v4154_v8 = vpop.f32.mrf.mxu1 }
 0x7c0   :  { %v1054_v10 = vadd.f32 %v4154_v8, %v3739_v7 }
 0x7c1   :  { %v1048_v11 = vpop.f32.mrf.mxu1 }
 0x7c2   :  { %v1049_v12 = vadd.f32 %v3738_v9, %v1048_v11  ;;  %v1070_v13 = vsel %vm318_vm3, %v1054_v10, -inf }
 0x7c3   :  { %1071 = vmax.xlane.f32.xlu1 %v1070_v13  ;;  %v4157_v14 = vpop.f32.mrf.mxu1 }
 0x7c4   :  { %v1067_v16 = vsel %vm318_vm3, %v1049_v12, -inf  ;;  %v1064_v20 = vadd.f32 %v4157_v14, %v3741_v17 }
 0x7c5   :  { %1068 = vmax.xlane.f32.xlu0 %v1067_v16  ;;  %v1058_v18 = vpop.f32.mrf.mxu1 }
 0x7c6   :  { %v1059_v19 = vadd.f32 %v3740_v15, %v1058_v18  ;;  %v1076_v22 = vsel %vm328_vm4, %v1064_v20, -inf }
 0x7c8   :  { %v1073_v21 = vsel %vm318_vm3, %v1059_v19, -inf }
 0x7c9   :  { %1074 = vmax.xlane.f32.xlu0 %v1073_v21 }
 0x7cd   :  { %1077 = vmax.xlane.f32.xlu0 %v1076_v22 }
 0x7cf   :  { %v4190_v47 = vpop.f32.mrf.mxu1 }
 0x7d0   :  { %v1431_v60 = vadd.f32 %v4190_v47, %v3760_v59 }
 0x7d1   :  { %v1425_v48 = vpop.f32.mrf.mxu1 }
 0x7d2   :  { %v1426_v51 = vadd.f32 %v3759_v49, %v1425_v48  ;;  %v1447_v62 = vsel %vm318_vm3, %v1431_v60, -inf }
 0x7d3   :  { %v4193_v50 = vpop.f32.mrf.mxu1 }
 0x7d4   :  { %v1444_v55 = vsel %vm318_vm3, %v1426_v51, -inf  ;;  %v1441_v57 = vadd.f32 %v4193_v50, %v3762_v56 }
 0x7d5   :  { %v1435_v52 = vpop.f32.mrf.mxu1 }
 0x7d6   :  { %v1436_v54 = vadd.f32 %v3761_v53, %v1435_v52  ;;  %v1453_v61 = vsel %vm328_vm4, %v1441_v57, -inf }
 0x7d8   :  { %v1450_v58 = vsel %vm318_vm3, %v1436_v54, -inf }
 0x84c   :  { %v1072_v23 = vpop.xlane.xlu1 %1071 }
 0x84d   :  { %v1080_v24 = vsub.f32 %v1054_v10, %v1072_v23 }
 0x84e   :  { %v1069_v25 = vpop.xlane.xlu0 %1068 }
 0x84f   :  { %v1085_v26 = vmul.f32 1.442695, %v1080_v24  ;;  %v1079_v27 = vsub.f32 %v1049_v12, %v1069_v25 }
 0x851   :  { %4488 = vpow2.f32 %v1085_v26  ;;  %v1083_v28 = vmul.f32 1.442695, %v1079_v27 }
 0x852   :  { %v1075_v29 = vpop.xlane.xlu0 %1074 }
 0x853   :  { %4490 = vpow2.f32 %v1083_v28  ;;  %v1081_v30 = vsub.f32 %v1059_v19, %v1075_v29 }
 0x855   :  { %v1087_v31 = vmul.f32 1.442695, %v1081_v30 }
 0x856   :  { %v1078_v32 = vpop.xlane.xlu0 %1077 }
 0x857   :  { %4492 = vpow2.f32 %v1087_v31  ;;  %v1082_v33 = vsub.f32 %v1064_v20, %v1078_v32 }
 0x859   :  { %v1089_v34 = vmul.f32 1.442695, %v1082_v33 }
 0x85b   :  { %4494 = vpow2.f32 %v1089_v34 }
 0x85e   :  { %v4489_v35 = vpop.eup %4488 }
 0x85f   :  { %v1094_v36 = vsel %vm318_vm3, %v4489_v35, 0.0 }
 0x860   :  { %v4491_v37 = vpop.eup %4490  ;;  %1095 = vadd.xlane.f32.xlu1 %v1094_v36 }
 0x861   :  { %v1091_v38 = vsel %vm318_vm3, %v4491_v37, 0.0 }
 0x862   :  { %1092 = vadd.xlane.f32.xlu0 %v1091_v38 }
 0x864   :  { %v4493_v39 = vpop.eup %4492 }
 0x865   :  { %v1097_v40 = vsel %vm318_vm3, %v4493_v39, 0.0 }
 0x866   :  { %1098 = vadd.xlane.f32.xlu0 %v1097_v40  ;;  %v4140_v40 = vpop.f32.mrf.mxu0 }
 0x868   :  { %v4495_v45 = vpop.eup %4494 }
 0x869   :  { %v1100_v46 = vsel %vm328_vm4, %v4495_v45, 0.0 }
 0x86a   :  { %1101 = vadd.xlane.f32.xlu1 %v1100_v46 }
 0x87b   :  { %1115 = vrot.lane.b32.xlu1 %v4742_v44, %s4621_s30 }
 0x87c   :  { %1117 = vrot.lane.b32.xlu0 %v4738_v43, %s4621_s30 }
 0x87f   :  { %1113 = vrot.lane.b32.xlu1 %v4732_v41, %s4621_s30 }
 0x883   :  { %1111 = vrot.lane.b32.xlu1 %v4734_v42, %s4621_s30 }
 0x89b   :  { %1445 = vmax.xlane.f32.xlu0 %v1444_v55 }
 0x89f   :  { %1451 = vmax.xlane.f32.xlu0 %v1450_v58 }
 0x8a3   :  { %1454 = vmax.xlane.f32.xlu0 %v1453_v61 }
 0x8a7   :  { %1448 = vmax.xlane.f32.xlu1 %v1447_v62 }
 0x8e9   :  { %v1096_v0 = vpop.xlane.xlu1 %1095 }
 0x8eb   :  { %v1093_v63 = vpop.xlane.xlu0 %1092 }
 0x8ec   :  { %4496 = vrcp.f32 %v1093_v63 }
 0x8ed   :  { %4498 = vrcp.f32 %v1096_v0  ;;  %v199_v0 = vld [vmem:[%s5505_s5 + $0x18] sm:$0xff] }
 0x8ef   :  { %v1099_v1 = vpop.xlane.xlu0 %1098 }
 0x8f0   :  { %4500 = vrcp.f32 %v1099_v1  ;;  %v932_v1 = vadd.f32 %v4140_v40, %v4926_v3 }
 0x8f3   :  { %v1102_v2 = vpop.xlane.xlu1 %1101  ;;  %v1118_v7 = vpop.permute.xlu0 %1117 }
 0x8f4   :  { %4502 = vrcp.f32 %v1102_v2  ;;  %4158 = vmatprep.subr.msk.mxu0 %vm387_vm5, %v1118_v7 }
 0x8f5   :  { %4159 = vmatpush3.msk.msra.mxu0 %vm387_vm5, %v1118_v7 }
 0x8f7   :  { %v1116_v8 = vpop.permute.xlu1 %1115 }
 0x8f8   :  { %4160 = vmatprep.subr.mxu0 %v1116_v8 }
 0x8f9   :  { %v4497_v9 = vpop.eup %4496  ;;  %4161 = vmatpush3.msra.mxu0 %v1116_v8 }
 0x8fa   :  { %v1107_v10 = vmul.f32 %v4497_v9, %v4491_v37  ;;  %v4499_v12 = vpop.eup %4498  ;;  %v198_v37 = vld [vmem:[%s5505_s5 + $0x10] sm:$0xff] }
 0x8fb   :  { %v1114_v11 = vpop.permute.xlu1 %1113  ;;  %v1108_v15 = vmul.f32 %v4499_v12, %v4489_v35 }
 0x8fc   :  { %4162 = vmatprep.subr.mxu0 %v1114_v11  ;;  %4166 = vmatprep.mubr.msk.f32.mxu0 %vm318_vm3, %v1107_v10 }
 0x8fd   :  { %4163 = vmatpush3.msra.mxu0 %v1114_v11  ;;  %v4501_v13 = vpop.eup %4500 }
 0x8fe   :  { %v1109_v17 = vmul.f32 %v4501_v13, %v4493_v39 }
 0x8ff   :  { %v1112_v14 = vpop.permute.xlu1 %1111 }
 0x900   :  { %4164 = vmatprep.subr.mxu0 %v1112_v14 }
 0x901   :  { %v4503_v16 = vpop.eup %4502  ;;  %4165 = vmatpush3.msra.mxu0 %v1112_v14 }
 0x902   :  { %4167 = vmatmul.mubr.msk.f32.vlgmr.msra.gmra.mxu0 %vm318_vm3, %v1108_v15  ;;  %v1110_v18 = vmul.f32 %v4503_v16, %v4495_v45  ;;  %4172 = vmatprep.subr.mxu0 %v198_v37  ;;  %v926_v45 = vpop.f32.mrf.mxu0 }
 0x903   :  { %4169 = vmatprep.mubr.msk.f32.mxu0 %vm318_vm3, %v1109_v17  ;;  %4173 = vmatpush3.msra.mxu0 %v198_v37  ;;  %v927_v7 = vadd.f32 %v926_v45, %v4928_v4  ;;  %v1750_v45 = vld [vmem:[%s5506_s6 + $0x18] sm:$0xff] }
 0x904   :  { %v4143_v46 = vpop.f32.mrf.mxu0  ;;  %4216 = vmatprep.subr.mxu1 %v1750_v45 }
 0x905   :  { %v942_v10 = vadd.f32 %v4143_v46, %v4930_v5  ;;  %4217 = vmatpush3.msra.mxu1 %v1750_v45  ;;  %v1749_v46 = vld [vmem:[%s5506_s6 + $0x10] sm:$0xff] }
 0x906   :  { %4170 = vmatmul.mubr.msk.f32.gmra.mxu0 %vm318_vm3, %v1110_v18  ;;  %v936_v47 = vpop.f32.mrf.mxu0  ;;  %4218 = vmatprep.subr.mxu1 %v1749_v46 }
 0x907   :  { %v937_v13 = vadd.f32 %v936_v47, %v4932_v6  ;;  %v4564_v6 = vld [vmem:[%s5500_s0 + $0x8] sm:$0xff]  ;;  %4219 = vmatpush3.msra.mxu1 %v1749_v46 }
 0x908   :  { %v1748_v47 = vld [vmem:[%s5506_s6 + $0x8] sm:$0xff] }
 0x909   :  { %4220 = vmatprep.subr.mxu1 %v1748_v47 }
 0x90a   :  { %4221 = vmatpush3.msra.mxu1 %v1748_v47 }
 0x924   :  { %v1446_v19 = vpop.xlane.xlu0 %1445 }
 0x925   :  { %v1456_v20 = vsub.f32 %v1426_v51, %v1446_v19 }
 0x927   :  { %v1460_v21 = vmul.f32 1.442695, %v1456_v20 }
 0x928   :  { %v1452_v22 = vpop.xlane.xlu0 %1451 }
 0x929   :  { %4504 = vpow2.f32 %v1460_v21  ;;  %v1458_v23 = vsub.f32 %v1436_v54, %v1452_v22 }
 0x92b   :  { %v1464_v24 = vmul.f32 1.442695, %v1458_v23 }
 0x92c   :  { %v1455_v25 = vpop.xlane.xlu0 %1454 }
 0x92d   :  { %4506 = vpow2.f32 %v1464_v24  ;;  %v1459_v26 = vsub.f32 %v1441_v57, %v1455_v25  ;;  %v4565_v24 = vld [vmem:[%s5500_s0] sm:$0xff] }
 0x92f   :  { %v1466_v29 = vmul.f32 1.442695, %v1459_v26 }
 0x930   :  { %v1449_v27 = vpop.xlane.xlu1 %1448 }
 0x931   :  { %v1457_v28 = vsub.f32 %v1431_v60, %v1449_v27 }
 0x933   :  { %v1462_v30 = vmul.f32 1.442695, %v1457_v28 }
 0x935   :  { %4508 = vpow2.f32 %v1462_v30 }
 0x936   :  { %v4505_v31 = vpop.eup %4504  ;;  %4510 = vpow2.f32 %v1466_v29 }
 0x937   :  { %v1468_v32 = vsel %vm318_vm3, %v4505_v31, 0.0 }
 0x938   :  { %1469 = vadd.xlane.f32.xlu0 %v1468_v32  ;;  %v4566_v32 = vld [vmem:[%s5500_s0 + $0x18] sm:$0x3f] }
 0x93a   :  { %v4507_v33 = vpop.eup %4506 }
 0x93b   :  { %v1474_v34 = vsel %vm318_vm3, %v4507_v33, 0.0 }
 0x93c   :  { %1475 = vadd.xlane.f32.xlu0 %v1474_v34  ;;  %v4567_v34 = vld [vmem:[%s5500_s0 + $0x10] sm:$0xff] }
 0x942   :  { %v4509_v35 = vpop.eup %4508 }
 0x943   :  { %v1471_v36 = vsel %vm318_vm3, %v4509_v35, 0.0  ;;  %v4511_v38 = vpop.eup %4510 }
 0x944   :  { %1472 = vadd.xlane.f32.xlu1 %v1471_v36  ;;  %v1477_v39 = vsel %vm328_vm4, %v4511_v38, 0.0 }
 0x948   :  { %1478 = vadd.xlane.f32.xlu1 %v1477_v39 }
 0x952   :  { %1494 = vrot.lane.b32.xlu0 %v4738_v43, %s4622_s29 }
 0x959   :  { %1492 = vrot.lane.b32.xlu1 %v4742_v44, %s4622_s29 }
 0x95d   :  { %1490 = vrot.lane.b32.xlu1 %v4732_v41, %s4622_s29 }
 0x961   :  { %1488 = vrot.lane.b32.xlu1 %v4734_v42, %s4622_s29 }
 0x9c1   :  { %v1470_v48 = vpop.xlane.xlu0 %1469 }
 0x9c2   :  { %4512 = vrcp.f32 %v1470_v48  ;;  %v4168_v49 = vpop.f32.mrf.mxu0  ;;  %v1747_v48 = vld [vmem:[%s5506_s6] sm:$0xff] }
 0x9c3   :  { %4222 = vmatprep.subr.mxu1 %v1747_v48 }
 0x9c4   :  { %v1202_v50 = vpop.f32.mrf.mxu0  ;;  %4223 = vmatpush3.msra.mxu1 %v1747_v48 }
 0x9c5   :  { %4174 = vmatprep.mubr.msk.f32.mxu0 %vm216_vm2, %v1202_v50  ;;  %v1476_v51 = vpop.xlane.xlu0 %1475  ;;  %v1758_v50 = vld [vmem:[%s5507_s7 + $0x38] sm:$0xff] }
 0x9c6   :  { %v4171_v52 = vpop.f32.mrf.mxu0  ;;  %4175 = vmatmul.mubr.msk.f32.vlgmr.msra.gmra.mxu0 %vm216_vm2, %v4168_v49  ;;  %v5059_v49 = vld [vmem:[%s5509_s9] sm:$0x1] }
 0x9c8   :  { %v1212_v43 = vpop.f32.mrf.mxu0 }
 0x9c9   :  { %4177 = vmatprep.mubr.msk.f32.mxu0 %vm216_vm2, %v1212_v43  ;;  %v1495_v41 = vpop.permute.xlu0 %1494  ;;  %v1756_v43 = vld [vmem:[%s5507_s7 + $0x28] sm:$0xff] }
 0x9ca   :  { %4178 = vmatmul.mubr.msk.f32.gmra.mxu0 %vm216_vm2, %v4171_v52  ;;  %4194 = vmatprep.subr.msk.mxu0 %vm387_vm5, %v1495_v41  ;;  %v2009_v52 = vmul.f32 %v5059_v49, %v5059_v49 }
 0x9cb   :  { %4195 = vmatpush3.msk.msra.mxu0 %vm387_vm5, %v1495_v41 }
 0x9cc   :  { %v2011_v41 = vsel %vm2010_vm6, %v2009_v52, 0.0 }
 0x9cd   :  { %v1473_v42 = vpop.xlane.xlu1 %1472 }
 0x9ce   :  { %4514 = vrcp.f32 %v1473_v42  ;;  %v1755_v42 = vld [vmem:[%s5507_s7 + $0x20] sm:$0xff] }
 0x9cf   :  { %v4513_v44 = vpop.eup %4512  ;;  %4516 = vrcp.f32 %v1476_v51  ;;  %v1757_v51 = vld [vmem:[%s5507_s7 + $0x30] sm:$0xff] }
 0x9d0   :  { %v1484_v53 = vmul.f32 %v4513_v44, %v4505_v31  ;;  %v1754_v44 = vld [vmem:[%s5507_s7 + $0x18] sm:$0xff] }
 0x9d1   :  { %v1479_v54 = vpop.xlane.xlu1 %1478 }
 0x9d2   :  { %4518 = vrcp.f32 %v1479_v54  ;;  %4202 = vmatprep.mubr.msk.f32.mxu0 %vm318_vm3, %v1484_v53 }
 0x9d5   :  { %v1493_v55 = vpop.permute.xlu1 %1492 }
 0x9d6   :  { %4196 = vmatprep.subr.mxu0 %v1493_v55 }
 0x9d7   :  { %4197 = vmatpush3.msra.mxu0 %v1493_v55 }
 0x9d9   :  { %v1491_v56 = vpop.permute.xlu1 %1490 }
 0x9da   :  { %4198 = vmatprep.subr.mxu0 %v1491_v56 }
 0x9db   :  { %v4515_v57 = vpop.eup %4514  ;;  %4199 = vmatpush3.msra.mxu0 %v1491_v56 }
 0x9dc   :  { %v4517_v58 = vpop.eup %4516  ;;  %v1485_v60 = vmul.f32 %v4515_v57, %v4509_v35 }
 0x9dd   :  { %v1489_v59 = vpop.permute.xlu1 %1488  ;;  %v1486_v62 = vmul.f32 %v4517_v58, %v4507_v33 }
 0x9de   :  { %4200 = vmatprep.subr.mxu0 %v1489_v59 }
 0x9df   :  { %v4519_v61 = vpop.eup %4518  ;;  %4201 = vmatpush3.msra.mxu0 %v1489_v59 }
 0x9e0   :  { %4203 = vmatmul.mubr.msk.f32.vlgmr.msra.gmra.mxu0 %vm318_vm3, %v1485_v60  ;;  %v1487_v63 = vmul.f32 %v4519_v61, %v4511_v38  ;;  %4208 = vmatprep.subr.mxu0 %v199_v0 }
 0x9e1   :  { %4205 = vmatprep.mubr.msk.f32.mxu0 %vm318_vm3, %v1486_v62  ;;  %4209 = vmatpush3.msra.mxu0 %v199_v0 }
 0x9e2   :  { %4230 = vmatprep.subr.mxu0 %v1758_v50 }
 0x9e4   :  { %4206 = vmatmul.mubr.msk.f32.gmra.mxu0 %vm318_vm3, %v1487_v63 }
 0xa86   :  { %v4176_v2 = vpop.f32.mrf.mxu0 }
 0xa87   :  { %v1319_v8 = vadd.f32 %v4176_v2, %v932_v1 }
 0xa88   :  { %v1299_v9 = vpop.f32.mrf.mxu0 }
 0xa89   :  { %v1318_v11 = vadd.f32 %v1299_v9, %v927_v7 }
 0xa8a   :  { %v4179_v12 = vpop.f32.mrf.mxu0 }
 0xa8b   :  { %v1321_v14 = vadd.f32 %v4179_v12, %v942_v10 }
 0xa8c   :  { %v1309_v15 = vpop.f32.mrf.mxu0 }
 0xa8d   :  { %v1320_v16 = vadd.f32 %v1309_v15, %v937_v13 }
 0xaa0   :  { %v4204_v17 = vpop.f32.mrf.mxu0 }
 0xaa2   :  { %v1579_v18 = vpop.f32.mrf.mxu0 }
 0xaa3   :  { %4210 = vmatprep.mubr.msk.f32.mxu0 %vm216_vm2, %v1579_v18 }
 0xaa4   :  { %v4207_v19 = vpop.f32.mrf.mxu0  ;;  %4211 = vmatmul.mubr.msk.f32.vlgmr.msra.gmra.mxu0 %vm216_vm2, %v4204_v17 }
 0xaa5   :  { %4231 = vmatpush3.msra.mxu0 %v1758_v50 }
 0xaa6   :  { %v1589_v3 = vpop.f32.mrf.mxu0  ;;  %4232 = vmatprep.subr.mxu0 %v1757_v51 }
 0xaa7   :  { %4213 = vmatprep.mubr.msk.f32.mxu0 %vm216_vm2, %v1589_v3  ;;  %4233 = vmatpush3.msra.mxu0 %v1757_v51 }
 0xaa8   :  { %4214 = vmatmul.mubr.msk.f32.gmra.mxu0 %vm216_vm2, %v4207_v19  ;;  %4234 = vmatprep.subr.mxu0 %v1756_v43 }
 0xaa9   :  { %4235 = vmatpush3.msra.mxu0 %v1756_v43 }
 0xaaa   :  { %4236 = vmatprep.subr.mxu0 %v1755_v42 }
 0xaab   :  { %4237 = vmatpush3.msra.mxu0 %v1755_v42 }
 0xaac   :  { %4238 = vmatprep.subr.mxu0 %v1754_v44 }
 0xaad   :  { %4239 = vmatpush3.msra.mxu0 %v1754_v44 }
 0xb64   :  { %v4212_v4 = vpop.f32.mrf.mxu0 }
 0xb65   :  { %v1696_v5 = vadd.f32 %v4212_v4, %v1319_v8  ;;  %v3781_v8 = vld [vmem:[%s5508_s8 + $0x1] ss:$0 sm:$0xff]  ;;  %v1753_v4 = vld [vmem:[%s5507_s7 + $0x10] sm:$0xff] }
 0xb66   :  { %v1676_v20 = vpop.f32.mrf.mxu0  ;;  %4240 = vmatprep.subr.mxu0 %v1753_v4 }
 0xb67   :  { %v5015_v21 = vadd.f32 %v4564_v6, %v1696_v5  ;;  %v1695_v22 = vadd.f32 %v1676_v20, %v1318_v11  ;;  %4241 = vmatpush3.msra.mxu0 %v1753_v4  ;;  %v1752_v5 = vld [vmem:[%s5507_s7 + $0x8] sm:$0xff]  ;;  %v1751_v20 = vld [vmem:[%s5507_s7] sm:$0xff] }
 0xb68   :  { %v4215_v23 = vpop.f32.mrf.mxu0  ;;  %4242 = vmatprep.subr.mxu0 %v1752_v5 }
 0xb69   :  { %v5020_v25 = vadd.f32 %v4565_v24, %v1695_v22  ;;  %v1698_v26 = vadd.f32 %v4215_v23, %v1321_v14  ;;  %v1706_v27 = vmul.f32 %v5015_v21, %v5015_v21  ;;  %4243 = vmatpush3.msra.mxu0 %v1752_v5  ;;  %v4623_v23 = vmov 0.0   ;;  %v3796_v24 = vld [vmem:[%s5505_s5 + $0x38] sm:$0xff] }
 0xb6a   :  { %v1686_v28 = vpop.f32.mrf.mxu0  ;;  %4244 = vmatprep.subr.mxu0 %v1751_v20  ;;  %4252 = vmatprep.subr.mxu1 %v4623_v23 }
 0xb6b   :  { %v1697_v29 = vadd.f32 %v1686_v28, %v1320_v16  ;;  %v1712_v30 = vsel %vm54_vm0, %v1706_v27, 0.0  ;;  %v1705_v31 = vmul.f32 %v5020_v25, %v5020_v25  ;;  %v5030_v33 = vadd.f32 %v4566_v32, %v1698_v26  ;;  %4245 = vmatpush3.msra.mxu0 %v1751_v20  ;;  %v3795_v26 = vld [vmem:[%s5505_s5 + $0x30] sm:$0xff]  ;;  %v3794_v27 = vld [vmem:[%s5505_s5 + $0x28] sm:$0xff]  ;;  %v3792_v28 = vld [vmem:[%s5508_s8 + $0x3] sm:$0x1] }
 0xb6c   :  { %1713 = vadd.xlane.f32.xlu1 %v1712_v30 }
 0xb6d   :  { %v5035_v35 = vadd.f32 %v4567_v34, %v1697_v29  ;;  %v1709_v36 = vsel %vm54_vm0, %v1705_v31, 0.0  ;;  %v1708_v39 = vmul.f32 %v5030_v33, %v5030_v33  ;;  %v3793_v29 = vld [vmem:[%s5505_s5 + $0x20] sm:$0xff] }
 0xb6e   :  { %1710 = vadd.xlane.f32.xlu0 %v1709_v36 }
 0xb6f   :  { %v1707_v37 = vmul.f32 %v5035_v35, %v5035_v35  ;;  %v1718_v40 = vsel %vm64_vm1, %v1708_v39, 0.0 }
 0xb71   :  { %v1715_v38 = vsel %vm54_vm0, %v1707_v37, 0.0 }
 0xb72   :  { %1716 = vadd.xlane.f32.xlu0 %v1715_v38 }
 0xb76   :  { %1719 = vadd.xlane.f32.xlu0 %v1718_v40 }
 0xb7a   :  { %2012 = vadd.xlane.f32.xlu0 %v2011_v41 }
 0xbf5   :  { %v1714_v53 = vpop.xlane.xlu1 %1713 }
 0xbf6   :  { %v1722_v54 = vmul.f32 0.03125, %v1714_v53 }
 0xbf7   :  { %v1711_v55 = vpop.xlane.xlu0 %1710 }
 0xbf8   :  { %v1726_v56 = vadd.f32 1e-06, %v1722_v54  ;;  %v1721_v57 = vmul.f32 0.03125, %v1711_v55 }
 0xbfa   :  { %4520 = vrsqrt.f32 %v1726_v56  ;;  %v1725_v58 = vadd.f32 1e-06, %v1721_v57 }
 0xbfb   :  { %v1717_v59 = vpop.xlane.xlu0 %1716 }
 0xbfc   :  { %4522 = vrsqrt.f32 %v1725_v58  ;;  %v1723_v60 = vmul.f32 0.03125, %v1717_v59  ;;  %v2189_v59 = vld [vmem:[%s5504_s4 + $0x10] sm:$0xff] }
 0xbfe   :  { %v1727_v61 = vadd.f32 1e-06, %v1723_v60  ;;  %v2188_v60 = vld [vmem:[%s5504_s4 + $0x8] sm:$0xff] }
 0xbff   :  { %v1720_v62 = vpop.xlane.xlu0 %1719 }
 0xc00   :  { %4524 = vrsqrt.f32 %v1727_v61  ;;  %v1724_v63 = vmul.f32 0.03125, %v1720_v62  ;;  %v2187_v61 = vld [vmem:[%s5504_s4] sm:$0xff]  ;;  %v3802_v62 = vld [vmem:[%s5505_s5 + $0x58] sm:$0xff] }
 0xc02   :  { %v1728_v0 = vadd.f32 1e-06, %v1724_v63  ;;  %v3801_v63 = vld [vmem:[%s5505_s5 + $0x50] sm:$0xff] }
 0xc03   :  { %v2013_v18 = vpop.xlane.xlu0 %2012 }
 0xc04   :  { %4526 = vrsqrt.f32 %v1728_v0  ;;  %v2014_v19 = vmul.f32 0.03125, %v2013_v18  ;;  %v3800_v0 = vld [vmem:[%s5505_s5 + $0x48] sm:$0xff] }
 0xc06   :  { %v2015_v3 = vadd.f32 1e-06, %v2014_v19 }
 0xc07   :  { %v4521_v1 = vpop.eup %4520 }
 0xc08   :  { %v1734_v7 = vmul.f32 %v4521_v1, %v5015_v21  ;;  %4528 = vrsqrt.f32 %v2015_v3  ;;  %v3799_v1 = vld [vmem:[%s5505_s5 + $0x40] sm:$0xff] }
 0xc09   :  { %v4523_v2 = vpop.eup %4522 }
 0xc0a   :  { %v1733_v9 = vmul.f32 %v4523_v2, %v5020_v25  ;;  %v1744_v12 = vmul.f32 %v3781_v8, %v1734_v7 }
 0xc0c   :  { %v1743_v10 = vmul.f32 %v3781_v8, %v1733_v9 }
 0xc0d   :  { %v4525_v11 = vpop.eup %4524 }
 0xc0e   :  { %4224 = vmatprep.mubr.msk.f32.mxu1 %vm54_vm0, %v1743_v10  ;;  %v1735_v13 = vmul.f32 %v4525_v11, %v5035_v35 }
 0xc0f   :  { %4225 = vmatmul.mubr.msk.f32.vlgmr.msra.gmra.mxu1 %vm54_vm0, %v1744_v12 }
 0xc10   :  { %v1745_v14 = vmul.f32 %v3781_v8, %v1735_v13  ;;  %4253 = vmatpush3.msra.mxu1 %v3796_v24 }
 0xc11   :  { %v4527_v15 = vpop.eup %4526  ;;  %4254 = vmatprep.subr.mxu1 %v4623_v23 }
 0xc12   :  { %4227 = vmatprep.mubr.msk.f32.mxu1 %vm54_vm0, %v1745_v14  ;;  %v1736_v16 = vmul.f32 %v4527_v15, %v5030_v33  ;;  %4255 = vmatpush3.msra.mxu1 %v3795_v26 }
 0xc13   :  { %4256 = vmatprep.subr.mxu1 %v4623_v23 }
 0xc14   :  { %v1746_v17 = vmul.f32 %v3781_v8, %v1736_v16  ;;  %4257 = vmatpush3.msra.mxu1 %v3794_v27 }
 0xc15   :  { %v4529_v6 = vpop.eup %4528  ;;  %4258 = vmatprep.subr.mxu1 %v4623_v23 }
 0xc16   :  { %4228 = vmatmul.mubr.msk.f32.gmra.mxu1 %vm54_vm0, %v1746_v17  ;;  %v2017_v22 = vmul.f32 %v4529_v6, %v5059_v49  ;;  %v3791_v6 = vld [vmem:[%s5508_s8 + $0x2] ss:$0 sm:$0xff] }
 0xc17   :  { %4260 = vmatprep.mubr.msk.f32.mxu1 %vm4624_vm7, %v4623_v23  ;;  %4259 = vmatpush3.msra.mxu1 %v3793_v29 }
 0xc18   :  { %v2018_v30 = vmul.f32 %v3792_v28, %v2017_v22  ;;  %4263 = vmatprep.subr.mxu1 %v4623_v23 }
 0xc1a   :  { %4261 = vmatmul.mubr.msk.f32.vlgmr.msra.gmra.mxu1 %vm54_vm0, %v2018_v30 }
 0xc1b   :  { %4271 = vmatprep.mubr.msk.f32.mxu1 %vm4624_vm7, %v4623_v23  ;;  %4264 = vmatpush3.msra.mxu1 %v3802_v62 }
 0xc1c   :  { %4265 = vmatprep.subr.mxu1 %v4623_v23 }
 0xc1d   :  { %4266 = vmatpush3.msra.mxu1 %v3801_v63 }
 0xc1e   :  { %4267 = vmatprep.subr.mxu1 %v4623_v23 }
 0xc1f   :  { %4268 = vmatpush3.msra.mxu1 %v3800_v0 }
 0xc20   :  { %4269 = vmatprep.subr.mxu1 %v4623_v23 }
 0xc21   :  { %4270 = vmatpush3.msra.mxu1 %v3799_v1 }
 0xc22   :  { %4288 = vmatprep.subr.mxu1 %v4623_v23 }
 0xccf   :  { %v4226_v31 = vpop.f32.mrf.mxu1 }
 0xcd0   :  { %v1857_v36 = vmax.f32 %v4226_v31, 0.0 }
 0xcd1   :  { %v1837_v32 = vpop.f32.mrf.mxu1 }
 0xcd2   :  { %v1856_v34 = vmax.f32 %v1837_v32, 0.0 }
 0xcd4   :  { %4246 = vmatprep.mubr.msk.f32.mxu0 %vm1860_vm8, %v1856_v34 }
 0xcd5   :  { %4247 = vmatmul.mubr.msk.f32.vlgmr.msra.gmra.mxu0 %vm1860_vm8, %v1857_v36  ;;  %v3798_v36 = vld [vmem:[%s5508_s8 + $0x4] sm:$0x1] }
 0xcd6   :  { %v4229_v37 = vpop.f32.mrf.mxu1 }
 0xcd7   :  { %v1859_v40 = vmax.f32 %v4229_v37, 0.0 }
 0xcd8   :  { %v1847_v38 = vpop.f32.mrf.mxu1 }
 0xcd9   :  { %v1858_v39 = vmax.f32 %v1847_v38, 0.0 }
 0xcda   :  { %v2093_v45 = vpop.f32.mrf.mxu1 }
 0xcdb   :  { %4249 = vmatprep.mubr.msk.f32.mxu0 %vm1860_vm8, %v1858_v39 }
 0xcdc   :  { %4250 = vmatmul.mubr.msk.f32.gmra.mxu0 %vm1860_vm8, %v1859_v40  ;;  %v4262_v46 = vpop.f32.mrf.mxu1 }
 0xd95   :  { %v4248_v47 = vpop.f32.mrf.mxu0 }
 0xd96   :  { %v5130_v48 = vadd.f32 %v4248_v47, %v5015_v21  ;;  %v5145_v21 = vadd.f32 %v2093_v45, %v5059_v49 }
 0xd97   :  { %v1939_v50 = vpop.f32.mrf.mxu0 }
 0xd98   :  { %v5133_v51 = vadd.f32 %v1939_v50, %v5020_v25  ;;  %v1965_v52 = vmul.f32 %v5130_v48, %v5130_v48  ;;  %v2379_v50 = vlaneseq }
 0xd9a   :  { %v1971_v43 = vsel %vm54_vm0, %v1965_v52, 0.0  ;;  %v1964_v41 = vmul.f32 %v5133_v51, %v5133_v51 }
 0xd9b   :  { %1972 = vadd.xlane.f32.xlu0 %v1971_v43 }
 0xd9c   :  { %v4251_v42 = vpop.f32.mrf.mxu0  ;;  %v1968_v44 = vsel %vm54_vm0, %v1964_v41, 0.0  ;;  %v5245_v41 = vld [vmem:[%s5502_s2] sm:$0x3] }
 0xd9d   :  { %v5142_v53 = vadd.f32 %v4251_v42, %v5030_v33  ;;  %1969 = vadd.xlane.f32.xlu1 %v1968_v44  ;;  %v2100_v33 = vmul.f32 %v5145_v21, %v5145_v21 }
 0xd9e   :  { %v1949_v25 = vpop.f32.mrf.mxu0 }
 0xd9f   :  { %v5148_v54 = vadd.f32 %v1949_v25, %v5035_v35  ;;  %v1967_v55 = vmul.f32 %v5142_v53, %v5142_v53  ;;  %v2101_v49 = vsel %vm2010_vm6, %v2100_v33, 0.0  ;;  %v2190_v35 = vld [vmem:[%s5504_s4 + $0x18] sm:$0xff]  ;;  %s4568_s4 = scalar_lea.vmem %s3674_s23, 32 }
 0xda0   :  { %4274 = vmatprep.subr.mxu0 %v2190_v35  ;;  %p4569_p0 = scmp.ne.s32.totalorder %s3674_s23, %s4568_s4  ;;  %p4574_p2 = scmp.lt.s32.totalorder %s4568_s4, %s4568_s4 }
 0xda1   :  { %v1977_v56 = vsel %vm64_vm1, %v1967_v55, 0.0  ;;  %v1966_v57 = vmul.f32 %v5148_v54, %v5148_v54  ;;  %4275 = vmatpush3.msra.mxu0 %v2190_v35 }
 0xda2   :  { %1978 = vadd.xlane.f32.xlu0 %v1977_v56  ;;  %4276 = vmatprep.subr.mxu0 %v2189_v59  ;;  %p4575_p3 = por %p4574_p2, %p4573_p1 }
 0xda3   :  { %v1974_v58 = vsel %vm54_vm0, %v1966_v57, 0.0  ;;  %4277 = vmatpush3.msra.mxu0 %v2189_v59 }
 0xda4   :  { %1975 = vadd.xlane.f32.xlu1 %v1974_v58  ;;  %4278 = vmatprep.subr.mxu0 %v2188_v60  ;;  %p4576_p4 = pnand %p4575_p3, %p4569_p0 }
 0xda5   :  { %4279 = vmatpush3.msra.mxu0 %v2188_v60 }
 0xda6   :  { %4280 = vmatprep.subr.mxu0 %v2187_v61 }
 0xda7   :  { %4281 = vmatpush3.msra.mxu0 %v2187_v61 }
 0xda8   :  { %2102 = vadd.xlane.f32.xlu1 %v2101_v49  ;;  %4299 = vmatprep.subr.mxu0 %v4623_v23 }
 0xe24   :  { %v1973_v2 = vpop.xlane.xlu0 %1972 }
 0xe25   :  { %v1981_v7 = vmul.f32 0.03125, %v1973_v2 }
 0xe26   :  { %v1970_v8 = vpop.xlane.xlu1 %1969 }
 0xe27   :  { %v1985_v9 = vadd.f32 1e-06, %v1981_v7  ;;  %v1980_v10 = vmul.f32 0.03125, %v1970_v8 }
 0xe29   :  { %4530 = vrsqrt.f32 %v1985_v9  ;;  %v1984_v11 = vadd.f32 1e-06, %v1980_v10 }
 0xe2b   :  { %4532 = vrsqrt.f32 %v1984_v11  ;;  %v1979_v12 = vpop.xlane.xlu0 %1978 }
 0xe2c   :  { %v1983_v13 = vmul.f32 0.03125, %v1979_v12 }
 0xe2d   :  { %v1976_v14 = vpop.xlane.xlu1 %1975 }
 0xe2e   :  { %v1987_v15 = vadd.f32 1e-06, %v1983_v13  ;;  %v1982_v16 = vmul.f32 0.03125, %v1976_v14 }
 0xe30   :  { %4534 = vrsqrt.f32 %v1987_v15  ;;  %v1986_v17 = vadd.f32 1e-06, %v1982_v16 }
 0xe31   :  { %v2103_v18 = vpop.xlane.xlu1 %2102 }
 0xe32   :  { %4536 = vrsqrt.f32 %v1986_v17  ;;  %v2104_v19 = vmul.f32 0.03125, %v2103_v18 }
 0xe34   :  { %v2105_v3 = vadd.f32 1e-06, %v2104_v19 }
 0xe36   :  { %v4531_v4 = vpop.eup %4530  ;;  %4538 = vrsqrt.f32 %v2105_v3 }
 0xe37   :  { %v1993_v20 = vmul.f32 %v4531_v4, %v5130_v48 }
 0xe38   :  { %v4533_v5 = vpop.eup %4532 }
 0xe39   :  { %v1992_v22 = vmul.f32 %v4533_v5, %v5133_v51  ;;  %v2003_v26 = vmul.f32 %v3791_v6, %v1993_v20  ;;  %v2380_v51 = vshrl.u32 %v2379_v50, 7 }
 0xe3b   :  { %v2002_v24 = vmul.f32 %v3791_v6, %v1992_v22  ;;  %v5240_v52 = vsub.s32 0, %v2380_v51 }
 0xe3d   :  { %v4535_v27 = vpop.eup %4534  ;;  %4282 = vmatprep.mubr.msk.f32.mxu0 %vm54_vm0, %v2002_v24 }
 0xe3e   :  { %4283 = vmatmul.mubr.msk.f32.vlgmr.msra.gmra.mxu0 %vm54_vm0, %v2003_v26  ;;  %v1995_v29 = vmul.f32 %v4535_v27, %v5142_v53 }
 0xe3f   :  { %v4537_v28 = vpop.eup %4536 }
 0xe40   :  { %v1994_v30 = vmul.f32 %v4537_v28, %v5148_v54  ;;  %v2005_v34 = vmul.f32 %v3791_v6, %v1995_v29 }
 0xe42   :  { %v2004_v31 = vmul.f32 %v3791_v6, %v1994_v30 }
 0xe43   :  { %v4539_v32 = vpop.eup %4538 }
 0xe44   :  { %4285 = vmatprep.mubr.msk.f32.mxu0 %vm54_vm0, %v2004_v31  ;;  %v2107_v37 = vmul.f32 %v4539_v32, %v5145_v21 }
 0xe45   :  { %4286 = vmatmul.mubr.msk.f32.gmra.mxu0 %vm54_vm0, %v2005_v34 }
 0xe46   :  { %v2108_v38 = vmul.f32 %v3798_v36, %v2107_v37  ;;  %4307 = vmatprep.mubr.msk.f32.mxu0 %vm4624_vm7, %v4623_v23 }
 0xe48   :  { %4272 = vmatmul.mubr.msk.f32.vlgmr.msra.gmra.mxu1 %vm54_vm0, %v2108_v38 }
 0xe49   :  { %4296 = vmatprep.mubr.msk.f32.mxu1 %vm4624_vm7, %v4623_v23 }
 0xefe   :  { %v5208_v39 = vpop.f32.mrf.mxu0 }
 0xf00   :  { %v5210_v40 = vpop.f32.mrf.mxu0 }
 0xf05   :  { %v5212_v45 = vpop.f32.mrf.mxu0 }
 0xf06   :  { %4289 = vmatpush3.xpose.msk.msra.mxu1 %vm216_vm2, %v5212_v45 }
 0xf07   :  { %v5216_v46 = vpop.f32.mrf.mxu0  ;;  %4290 = vmatprep.subr.mxu1 %v4623_v23 }
 0xf08   :  { %v5219_v47 = vpop.f32.mrf.mxu1  ;;  %2400 = vrot.lane.b32.xlu1 %v5216_v46, %s4612_s25 }
 0xf0a   :  { %v4273_v48 = vpop.f32.mrf.mxu1  ;;  %4291 = vmatpush3.xpose.msk.msra.mxu1 %vm216_vm2, %v5216_v46 }
 0xf0b   :  { %4292 = vmatprep.subr.mxu1 %v4623_v23 }
 0xf0c   :  { %2398 = vrot.lane.b32.xlu1 %v5208_v39, %s4612_s25 }
 0xf0e   :  { %4293 = vmatpush3.xpose.msk.msra.mxu1 %vm216_vm2, %v5208_v39 }
 0xf0f   :  { %4294 = vmatprep.subr.mxu1 %v4623_v23 }
 0xf10   :  { %2396 = vrot.lane.b32.xlu1 %v5210_v40, %s4612_s25 }
 0xf12   :  { %4295 = vmatpush3.xpose.msk.msra.mxu1 %vm216_vm2, %v5210_v40 }
 0xf13   :  { %4321 = vmatprep.subr.mxu1 %v4623_v23 }
 0xf15   :  { %4297 = vmatmul.mubr.msk.f32.vlgmr.msra.gmra.mxu1 %vm216_vm2, %v5219_v47 }
 0xf16   :  { %4329 = vmatprep.mubr.msk.f32.mxu1 %vm4624_vm7, %v4623_v23 }
 0xf7a   :  { %v2401_v54 = vpop.permute.xlu1 %2400 }
 0xf7e   :  { %v2399_v33 = vpop.permute.xlu1 %2398 }
 0xf82   :  { %v2397_v49 = vpop.permute.xlu1 %2396 }
 0xfd5   :  { %v2375_v43 = vpop.f32.mrf.mxu1 }
 0xfd6   :  { %v2382_v42 = vrot.slane %v2375_v43, %v5240_v52 }
 0xfd7   :  { %v4298_v44 = vpop.f32.mrf.mxu1 }
 0xfd8   :  { %v2383_v53 = vadd.f32 %v2382_v42, %v5245_v41 }
 0xfda   :  { %v2385_v25 = vsel %vm2384_vm9, %v2383_v53, -inf }
 0xfdb   :  { %2386 = vmax.xlane.f32.xlu0 %v2385_v25 }
 0xff1   :  { %2402 = vrot.lane.b32.xlu0 %v5212_v45, %s4612_s25 }
 0xff5   :  { %2490 = vrot.lane.b32.xlu0 %v5212_v45, %s4615_s19 }
 0xff9   :  { %2486 = vrot.lane.b32.xlu0 %v5208_v39, %s4615_s19 }
 0xffd   :  { %2482 = vrot.lane.b32.xlu0 %v5219_v47, %s4615_s19 }
0x1001   :  { %2826 = vrot.lane.b32.xlu0 %v5216_v46, %s4618_s15 }
0x1005   :  { %2822 = vrot.lane.b32.xlu0 %v5210_v40, %s4618_s15 }
0x1064   :  { %v2387_v55 = vpop.xlane.xlu0 %2386 }
0x1065   :  { %v2388_v56 = vsub.f32 %v2383_v53, %v2387_v55 }
0x1067   :  { %v2389_v57 = vmul.f32 1.442695, %v2388_v56 }
0x1068   :  { %v2403_v58 = vpop.permute.xlu0 %2402 }
0x1069   :  { %4540 = vpow2.f32 %v2389_v57  ;;  %4300 = vmatpush3.msk.msra.mxu0 %vm387_vm5, %v2403_v58  ;;  %v3808_v57 = vld [vmem:[%s5505_s5 + $0x60] sm:$0xff] }
0x106a   :  { %4301 = vmatprep.subr.mxu0 %v4623_v23 }
0x106b   :  { %4302 = vmatpush3.msra.mxu0 %v2401_v54  ;;  %v3809_v54 = vld [vmem:[%s5505_s5 + $0x68] sm:$0xff] }
0x106c   :  { %4303 = vmatprep.subr.mxu0 %v4623_v23  ;;  %v2491_v63 = vpop.permute.xlu0 %2490 }
0x106d   :  { %4304 = vmatpush3.msra.mxu0 %v2399_v33 }
0x106e   :  { %4305 = vmatprep.subr.mxu0 %v4623_v23 }
0x106f   :  { %4306 = vmatpush3.msra.mxu0 %v2397_v49 }
0x1070   :  { %4310 = vmatprep.subr.mxu0 %v4623_v23  ;;  %v2487_v1 = vpop.permute.xlu0 %2486 }
0x1074   :  { %v2483_v7 = vpop.permute.xlu0 %2482 }
0x1076   :  { %v4541_v35 = vpop.eup %4540 }
0x1077   :  { %v2391_v59 = vsel %vm2384_vm9, %v4541_v35, 0.0 }
0x1078   :  { %2392 = vadd.xlane.f32.xlu1 %v2391_v59  ;;  %v2827_v9 = vpop.permute.xlu0 %2826 }
0x107c   :  { %v2823_v11 = vpop.permute.xlu0 %2822 }
0x1089   :  { %2488 = vrot.lane.b32.xlu1 %v5216_v46, %s4615_s19 }
0x108d   :  { %2484 = vrot.lane.b32.xlu1 %v5210_v40, %s4615_s19 }
0x1091   :  { %2828 = vrot.lane.b32.xlu1 %v5212_v45, %s4618_s15 }
0x1095   :  { %2824 = vrot.lane.b32.xlu1 %v5208_v39, %s4618_s15 }
0x1099   :  { %2820 = vrot.lane.b32.xlu1 %v5219_v47, %s4618_s15 }
0x109d   :  { %2592 = vrot.lane.b32.xlu1 %v5216_v46, %s4614_s18 }
0x1101   :  { %v2393_v60 = vpop.xlane.xlu1 %2392 }
0x1102   :  { %4542 = vrcp.f32 %v2393_v60  ;;  %v3810_v60 = vld [vmem:[%s5505_s5 + $0x70] sm:$0xff] }
0x1105   :  { %v2489_v0 = vpop.permute.xlu1 %2488 }
0x1109   :  { %v2485_v2 = vpop.permute.xlu1 %2484 }
0x110d   :  { %v2829_v8 = vpop.permute.xlu1 %2828 }
0x110f   :  { %v4543_v61 = vpop.eup %4542 }
0x1110   :  { %v2395_v62 = vmul.f32 %v4543_v61, %v4541_v35 }
0x1111   :  { %v2825_v10 = vpop.permute.xlu1 %2824 }
0x1112   :  { %4308 = vmatmul.mubr.msk.f32.vlgmr.msra.gmra.mxu0 %vm318_vm3, %v2395_v62 }
0x1113   :  { %4311 = vmatpush3.xpose.msk.msra.mxu0 %vm216_vm2, %v2491_v63  ;;  %4318 = vmatprep.mubr.msk.f32.mxu0 %vm4624_vm7, %v4623_v23 }
0x1114   :  { %4312 = vmatprep.subr.mxu0 %v4623_v23 }
0x1115   :  { %v2821_v12 = vpop.permute.xlu1 %2820 }
0x1117   :  { %4313 = vmatpush3.xpose.msk.msra.mxu0 %vm216_vm2, %v2489_v0 }
0x1118   :  { %4314 = vmatprep.subr.mxu0 %v4623_v23 }
0x1119   :  { %v2593_v28 = vpop.permute.xlu1 %2592 }
0x111b   :  { %4315 = vmatpush3.xpose.msk.msra.mxu0 %vm216_vm2, %v2487_v1 }
0x111c   :  { %4316 = vmatprep.subr.mxu0 %v4623_v23 }
0x111f   :  { %4317 = vmatpush3.xpose.msk.msra.mxu0 %vm216_vm2, %v2485_v2 }
0x1120   :  { %4342 = vmatprep.subr.mxu0 %v4623_v23 }
0x1122   :  { %4319 = vmatmul.mubr.msk.f32.vlgmr.msra.gmra.mxu0 %vm216_vm2, %v2483_v7 }
0x1123   :  { %4343 = vmatpush3.xpose.msk.msra.mxu0 %vm216_vm2, %v2829_v8  ;;  %4350 = vmatprep.mubr.msk.f32.mxu0 %vm4624_vm7, %v4623_v23 }
0x1124   :  { %4344 = vmatprep.subr.mxu0 %v4623_v23 }
0x1127   :  { %4345 = vmatpush3.xpose.msk.msra.mxu0 %vm216_vm2, %v2827_v9 }
0x1128   :  { %4346 = vmatprep.subr.mxu0 %v4623_v23 }
0x112b   :  { %4347 = vmatpush3.xpose.msk.msra.mxu0 %vm216_vm2, %v2825_v10 }
0x112c   :  { %4348 = vmatprep.subr.mxu0 %v4623_v23 }
0x112f   :  { %4349 = vmatpush3.xpose.msk.msra.mxu0 %vm216_vm2, %v2823_v11 }
0x1130   :  { %4380 = vmatprep.subr.mxu0 %v4623_v23 }
0x1132   :  { %4351 = vmatmul.mubr.msk.f32.vlgmr.msra.gmra.mxu0 %vm216_vm2, %v2821_v12 }
0x1133   :  { %4388 = vmatprep.mubr.msk.f32.mxu0 %vm4624_vm7, %v4623_v23 }
0x11d2   :  { %v5305_v13 = vpop.f32.mrf.mxu0 }
0x11d4   :  { %v4309_v14 = vpop.f32.mrf.mxu0 }
0x11e2   :  { %v2568_v15 = vpop.f32.mrf.mxu0 }
0x11e3   :  { %v2575_v16 = vrot.slane %v2568_v15, %v5240_v52 }
0x11e4   :  { %v4320_v17 = vpop.f32.mrf.mxu0 }
0x11e5   :  { %v2576_v18 = vadd.f32 %v2575_v16, %v5245_v41 }
0x11e7   :  { %v2577_v19 = vsel %vm2384_vm9, %v2576_v18, -inf }
0x11e8   :  { %2578 = vmax.xlane.f32.xlu0 %v2577_v19 }
0x11f2   :  { %v2906_v3 = vpop.f32.mrf.mxu0 }
0x11f3   :  { %v2913_v5 = vrot.slane %v2906_v3, %v5240_v52 }
0x11f4   :  { %v4352_v4 = vpop.f32.mrf.mxu0 }
0x11f5   :  { %v2914_v20 = vadd.f32 %v2913_v5, %v5245_v41 }
0x11f7   :  { %v2915_v6 = vsel %vm2384_vm9, %v2914_v20, -inf }
0x11fe   :  { %2594 = vrot.lane.b32.xlu0 %v5212_v45, %s4614_s18 }
0x1202   :  { %2590 = vrot.lane.b32.xlu0 %v5208_v39, %s4614_s18 }
0x1221   :  { %2916 = vmax.xlane.f32.xlu0 %v2915_v6 }
0x1237   :  { %2932 = vrot.lane.b32.xlu0 %v5212_v45, %s4617_s14 }
0x123b   :  { %2928 = vrot.lane.b32.xlu0 %v5208_v39, %s4617_s14 }
0x123f   :  { %3094 = vrot.lane.b32.xlu0 %v5212_v45, %s4620_s17 }
0x1243   :  { %3090 = vrot.lane.b32.xlu0 %v5208_v39, %s4620_s17 }
0x1247   :  { %3086 = vrot.lane.b32.xlu0 %v5219_v47, %s4620_s17 }
0x124b   :  { %3198 = vrot.lane.b32.xlu0 %v5212_v45, %s4619_s16 }
0x1271   :  { %v2579_v22 = vpop.xlane.xlu0 %2578 }
0x1272   :  { %v2580_v24 = vsub.f32 %v2576_v18, %v2579_v22 }
0x1274   :  { %v2581_v26 = vmul.f32 1.442695, %v2580_v24  ;;  %v3811_v24 = vld [vmem:[%s5505_s5 + $0x78] sm:$0xff] }
0x1275   :  { %v2595_v27 = vpop.permute.xlu0 %2594 }
0x1276   :  { %4544 = vpow2.f32 %v2581_v26  ;;  %4322 = vmatpush3.msk.msra.mxu1 %vm387_vm5, %v2595_v27 }
0x1277   :  { %4323 = vmatprep.subr.mxu1 %v4623_v23 }
0x1278   :  { %4324 = vmatpush3.msra.mxu1 %v2593_v28 }
0x1279   :  { %4325 = vmatprep.subr.mxu1 %v4623_v23  ;;  %v2591_v29 = vpop.permute.xlu0 %2590 }
0x127a   :  { %4326 = vmatpush3.msra.mxu1 %v2591_v29  ;;  %v3356_v29 = vrot.slane %v5145_v21, %v5240_v52  ;;  %v3847_v21 = vld [vmem:[%s5506_s6 + $0x28] sm:$0xff] }
0x127b   :  { %4327 = vmatprep.subr.mxu1 %v4623_v23 }
0x1283   :  { %v4545_v30 = vpop.eup %4544 }
0x1284   :  { %v2583_v31 = vsel %vm2384_vm9, %v4545_v30, 0.0 }
0x1285   :  { %2584 = vadd.xlane.f32.xlu1 %v2583_v31 }
0x1296   :  { %2588 = vrot.lane.b32.xlu1 %v5210_v40, %s4614_s18 }
0x129a   :  { %2930 = vrot.lane.b32.xlu1 %v5216_v46, %s4617_s14 }
0x12aa   :  { %v2917_v32 = vpop.xlane.xlu0 %2916 }
0x12ab   :  { %v2918_v34 = vsub.f32 %v2914_v20, %v2917_v32 }
0x12ad   :  { %v2919_v36 = vmul.f32 1.442695, %v2918_v34 }
0x12ae   :  { %v2933_v37 = vpop.permute.xlu0 %2932 }
0x12af   :  { %4546 = vpow2.f32 %v2919_v36  ;;  %v3849_v36 = vld [vmem:[%s5506_s6 + $0x38] sm:$0xff] }
0x12b2   :  { %v2929_v38 = vpop.permute.xlu0 %2928 }
0x12b6   :  { %v3095_v45 = vpop.permute.xlu0 %3094 }
0x12ba   :  { %v5338_v47 = vpop.permute.xlu0 %3090 }
0x12bc   :  { %v4547_v48 = vpop.eup %4546 }
0x12bd   :  { %v2921_v50 = vsel %vm2384_vm9, %v4547_v48, 0.0 }
0x12be   :  { %2922 = vadd.xlane.f32.xlu1 %v2921_v50  ;;  %v5341_v51 = vpop.permute.xlu0 %3086  ;;  %v3853_v50 = vld [vmem:[%s5507_s7 + $0x58] sm:$0xff] }
0x12c2   :  { %v3199_v43 = vpop.permute.xlu0 %3198 }
0x12c3   :  { %4381 = vmatpush3.msk.msra.mxu0 %vm387_vm5, %v3199_v43 }
0x12c4   :  { %4382 = vmatprep.subr.mxu0 %v4623_v23 }
0x12cf   :  { %2926 = vrot.lane.b32.xlu1 %v5210_v40, %s4617_s14 }
0x12d3   :  { %3092 = vrot.lane.b32.xlu1 %v5216_v46, %s4620_s17 }
0x12d7   :  { %3088 = vrot.lane.b32.xlu1 %v5210_v40, %s4620_s17 }
0x130e   :  { %v2585_v42 = vpop.xlane.xlu1 %2584 }
0x130f   :  { %4548 = vrcp.f32 %v2585_v42 }
0x1312   :  { %v2589_v44 = vpop.permute.xlu1 %2588 }
0x1313   :  { %4328 = vmatpush3.msra.mxu1 %v2589_v44 }
0x1314   :  { %4332 = vmatprep.subr.mxu1 %v4623_v23 }
0x1316   :  { %v2931_v55 = vpop.permute.xlu1 %2930 }
0x131c   :  { %v4549_v53 = vpop.eup %4548 }
0x131d   :  { %v2587_v25 = vmul.f32 %v4549_v53, %v4545_v30 }
0x131f   :  { %4330 = vmatmul.mubr.msk.f32.vlgmr.msra.gmra.mxu1 %vm318_vm3, %v2587_v25  ;;  %v3845_v25 = vld [vmem:[%s5508_s8 + $0x5] ss:$0 sm:$0xff] }
0x1320   :  { %4333 = vmatpush3.msra.mxu1 %v3809_v54  ;;  %4334 = vmatprep.mubr.msk.f32.mxu1 %vm4624_vm7, %v4623_v23 }
0x1321   :  { %4337 = vmatprep.subr.mxu1 %v4623_v23 }
0x1347   :  { %v2923_v56 = vpop.xlane.xlu1 %2922 }
0x1348   :  { %4550 = vrcp.f32 %v2923_v56  ;;  %v3851_v56 = vld [vmem:[%s5507_s7 + $0x48] sm:$0xff] }
0x134b   :  { %v2927_v35 = vpop.permute.xlu1 %2926 }
0x134f   :  { %v3093_v8 = vpop.permute.xlu1 %3092 }
0x1353   :  { %v3089_v9 = vpop.permute.xlu1 %3088 }
0x1355   :  { %v4551_v49 = vpop.eup %4550 }
0x1356   :  { %v2925_v59 = vmul.f32 %v4551_v49, %v4547_v48  ;;  %v3854_v48 = vld [vmem:[%s5507_s7 + $0x60] sm:$0xff] }
0x13df   :  { %v2670_v33 = vpop.f32.mrf.mxu1 }
0x13e0   :  { %4335 = vmatmul.mubr.msk.f32.vlgmr.msra.gmra.mxu1 %vm216_vm2, %v2670_v33 }
0x13e1   :  { %v4331_v58 = vpop.f32.mrf.mxu1  ;;  %4338 = vmatpush3.msra.mxu1 %v3808_v57  ;;  %4339 = vmatprep.mubr.msk.f32.mxu1 %vm4624_vm7, %v4623_v23  ;;  %v3850_v57 = vld [vmem:[%s5507_s7 + $0x40] sm:$0xff] }
0x13e2   :  { %4353 = vmatprep.subr.mxu1 %v4623_v23 }
0x13e4   :  { %4340 = vmatmul.mubr.msk.f32.vlgmr.msra.gmra.mxu1 %vm216_vm2, %v5305_v13 }
0x13e5   :  { %4354 = vmatpush3.msk.msra.mxu1 %vm387_vm5, %v2933_v37  ;;  %4361 = vmatprep.mubr.msk.f32.mxu1 %vm4624_vm7, %v4623_v23  ;;  %v3848_v37 = vld [vmem:[%s5506_s6 + $0x30] sm:$0xff] }
0x13e6   :  { %4355 = vmatprep.subr.mxu1 %v4623_v23 }
0x13e7   :  { %4356 = vmatpush3.msra.mxu1 %v2931_v55 }
0x13e8   :  { %4357 = vmatprep.subr.mxu1 %v4623_v23 }
0x13e9   :  { %4358 = vmatpush3.msra.mxu1 %v2929_v38  ;;  %v3857_v38 = vld [vmem:[%s5507_s7 + $0x78] sm:$0xff] }
0x13ea   :  { %4359 = vmatprep.subr.mxu1 %v4623_v23 }
0x13eb   :  { %4360 = vmatpush3.msra.mxu1 %v2927_v35 }
0x13ec   :  { %4362 = vmatmul.mubr.msk.f32.vlgmr.msra.gmra.mxu1 %vm318_vm3, %v2925_v59  ;;  %4364 = vmatprep.subr.mxu1 %v4623_v23 }
0x13ed   :  { %4366 = vmatprep.mubr.msk.f32.mxu1 %vm4624_vm7, %v4623_v23  ;;  %4365 = vmatpush3.msra.mxu1 %v3810_v60 }
0x13ee   :  { %4369 = vmatprep.subr.mxu1 %v4623_v23 }
0x14a0   :  { %v2743_v61 = vpop.f32.mrf.mxu1 }
0x14a2   :  { %v4336_v62 = vpop.f32.mrf.mxu1 }
0x14a4   :  { %v2816_v63 = vpop.f32.mrf.mxu1 }
0x14a5   :  { %v2817_v0 = vadd.f32 %v2816_v63, %v2743_v61 }
0x14a6   :  { %v4341_v1 = vpop.f32.mrf.mxu1 }
0x14ac   :  { %v3008_v2 = vpop.f32.mrf.mxu1 }
0x14ad   :  { %4367 = vmatmul.mubr.msk.f32.vlgmr.msra.gmra.mxu1 %vm216_vm2, %v3008_v2 }
0x14ae   :  { %4370 = vmatpush3.xpose.msk.msra.mxu1 %vm216_vm2, %v3095_v45  ;;  %v4363_v7 = vpop.f32.mrf.mxu1  ;;  %4377 = vmatprep.mubr.msk.f32.mxu1 %vm4624_vm7, %v4623_v23  ;;  %v3856_v45 = vld [vmem:[%s5507_s7 + $0x70] sm:$0xff] }
0x14af   :  { %4371 = vmatprep.subr.mxu1 %v4623_v23  ;;  %v3861_v7 = vld [vmem:[%s5508_s8 + $0x6] ss:$0 sm:$0xff] }
0x14b2   :  { %4372 = vmatpush3.xpose.msk.msra.mxu1 %vm216_vm2, %v3093_v8 }
0x14b3   :  { %4373 = vmatprep.subr.mxu1 %v4623_v23 }
0x14b6   :  { %4374 = vmatpush3.xpose.msk.msra.mxu1 %vm216_vm2, %v5338_v47  ;;  %v3855_v47 = vld [vmem:[%s5507_s7 + $0x68] sm:$0xff] }
0x14b7   :  { %4375 = vmatprep.subr.mxu1 %v4623_v23 }
0x14ba   :  { %4376 = vmatpush3.xpose.msk.msra.mxu1 %vm216_vm2, %v3089_v9 }
0x14bb   :  { %4407 = vmatprep.subr.mxu1 %v4623_v23 }
0x14bd   :  { %4378 = vmatmul.mubr.msk.f32.vlgmr.msra.gmra.mxu1 %vm216_vm2, %v5341_v51  ;;  %v3852_v51 = vld [vmem:[%s5507_s7 + $0x50] sm:$0xff] }
0x14be   :  { %4423 = vmatprep.mubr.msk.f32.mxu1 %vm4624_vm7, %v4623_v23  ;;  %4408 = vmatpush3.msra.mxu1 %v3857_v38 }
0x14bf   :  { %4409 = vmatprep.subr.mxu1 %v4623_v23 }
0x14c0   :  { %4410 = vmatpush3.msra.mxu1 %v3856_v45 }
0x14c1   :  { %4411 = vmatprep.subr.mxu1 %v4623_v23 }
0x14c2   :  { %4412 = vmatpush3.msra.mxu1 %v3855_v47 }
0x14c3   :  { %4413 = vmatprep.subr.mxu1 %v4623_v23 }
0x14c4   :  { %4414 = vmatpush3.msra.mxu1 %v3854_v48 }
0x14c5   :  { %4415 = vmatprep.subr.mxu1 %v4623_v23 }
0x14c6   :  { %4416 = vmatpush3.msra.mxu1 %v3853_v50 }
0x14c7   :  { %4417 = vmatprep.subr.mxu1 %v4623_v23 }
0x14c8   :  { %4418 = vmatpush3.msra.mxu1 %v3852_v51 }
0x14c9   :  { %4419 = vmatprep.subr.mxu1 %v4623_v23 }
0x14ca   :  { %4420 = vmatpush3.msra.mxu1 %v3851_v56 }
0x14cb   :  { %4421 = vmatprep.subr.mxu1 %v4623_v23 }
0x14cc   :  { %4422 = vmatpush3.msra.mxu1 %v3850_v57 }
0x156d   :  { %v3081_v10 = vpop.f32.mrf.mxu1 }
0x156e   :  { %v3085_v11 = vadd.f32 %v3081_v10, %v2817_v0 }
0x156f   :  { %v4368_v12 = vpop.f32.mrf.mxu1 }
0x157d   :  { %v3172_v13 = vpop.f32.mrf.mxu1 }
0x157e   :  { %v3179_v14 = vrot.slane %v3172_v13, %v5240_v52  ;;  %v3846_v52 = vld [vmem:[%s5506_s6 + $0x20] sm:$0xff] }
0x157f   :  { %v4379_v15 = vpop.f32.mrf.mxu1 }
0x1580   :  { %v3180_v16 = vadd.f32 %v3179_v14, %v5245_v41 }
0x1582   :  { %v3181_v17 = vsel %vm2384_vm9, %v3180_v16, -inf }
0x1583   :  { %3182 = vmax.xlane.f32.xlu1 %v3181_v17 }
0x1594   :  { %3196 = vrot.lane.b32.xlu1 %v5216_v46, %s4619_s16 }
0x1598   :  { %3194 = vrot.lane.b32.xlu1 %v5208_v39, %s4619_s16 }
0x160c   :  { %v3183_v18 = vpop.xlane.xlu1 %3182 }
0x160d   :  { %v3184_v19 = vsub.f32 %v3180_v16, %v3183_v18 }
0x160f   :  { %v3185_v3 = vmul.f32 1.442695, %v3184_v19 }
0x1610   :  { %v3197_v4 = vpop.permute.xlu1 %3196 }
0x1611   :  { %4552 = vpow2.f32 %v3185_v3  ;;  %4383 = vmatpush3.msra.mxu0 %v3197_v4 }
0x1612   :  { %4384 = vmatprep.subr.mxu0 %v4623_v23 }
0x1614   :  { %v3195_v5 = vpop.permute.xlu1 %3194 }
0x1615   :  { %4385 = vmatpush3.msra.mxu0 %v3195_v5  ;;  %v3648_v5 = vld [vmem:[%s5511_s11] sm:$0x3] }
0x1616   :  { %4386 = vmatprep.subr.mxu0 %v4623_v23 }
0x161e   :  { %v4553_v41 = vpop.eup %4552 }
0x161f   :  { %v3187_v20 = vsel %vm2384_vm9, %v4553_v41, 0.0 }
0x1620   :  { %3188 = vadd.xlane.f32.xlu0 %v3187_v20 }
0x1636   :  { %3192 = vrot.lane.b32.xlu0 %v5210_v40, %s4619_s16 }
0x16a9   :  { %v3189_v39 = vpop.xlane.xlu0 %3188 }
0x16aa   :  { %4554 = vrcp.f32 %v3189_v39 }
0x16ad   :  { %v3193_v46 = vpop.permute.xlu0 %3192 }
0x16ae   :  { %4387 = vmatpush3.msra.mxu0 %v3193_v46 }
0x16af   :  { %4391 = vmatprep.subr.mxu0 %v4623_v23 }
0x16b7   :  { %v4555_v6 = vpop.eup %4554 }
0x16b8   :  { %v3191_v22 = vmul.f32 %v4555_v6, %v4553_v41 }
0x16ba   :  { %4389 = vmatmul.mubr.msk.f32.vlgmr.msra.gmra.mxu0 %vm318_vm3, %v3191_v22 }
0x16bb   :  { %4392 = vmatpush3.msra.mxu0 %v3811_v24  ;;  %4393 = vmatprep.mubr.msk.f32.mxu0 %vm4624_vm7, %v4623_v23 }
0x16bc   :  { %4396 = vmatprep.subr.mxu0 %v4623_v23 }
0x177a   :  { %v3274_v40 = vpop.f32.mrf.mxu0 }
0x177b   :  { %4394 = vmatmul.mubr.msk.f32.vlgmr.msra.gmra.mxu0 %vm216_vm2, %v3274_v40 }
0x177c   :  { %v4390_v26 = vpop.f32.mrf.mxu0  ;;  %4404 = vmatprep.mubr.msk.f32.mxu0 %vm4624_vm7, %v4623_v23  ;;  %4397 = vmatpush3.msra.mxu0 %v3849_v36 }
0x177d   :  { %4398 = vmatprep.subr.mxu0 %v4623_v23 }
0x177e   :  { %4399 = vmatpush3.msra.mxu0 %v3848_v37 }
0x177f   :  { %4400 = vmatprep.subr.mxu0 %v4623_v23 }
0x1780   :  { %4401 = vmatpush3.msra.mxu0 %v3847_v21 }
0x1781   :  { %4402 = vmatprep.subr.mxu0 %v4623_v23 }
0x1782   :  { %4403 = vmatpush3.msra.mxu0 %v3846_v52 }
0x1783   :  { %4426 = vmatprep.subr.mxu0 %v4623_v23 }
0x183b   :  { %v3347_v27 = vpop.f32.mrf.mxu0 }
0x183c   :  { %v3351_v28 = vadd.f32 %v3347_v27, %v3085_v11 }
0x183d   :  { %v4395_v30 = vpop.f32.mrf.mxu0 }
0x183e   :  { %v3358_v31 = vadd.f32 %v3356_v29, %v3351_v28 }
0x1840   :  { %v3361_v32 = vmul.f32 %v3358_v31, %v3358_v31 }
0x1842   :  { %v3363_v34 = vsel %vm3362_vm10, %v3361_v32, 0.0 }
0x1843   :  { %3364 = vadd.xlane.f32.xlu1 %v3363_v34 }
0x18cc   :  { %v3365_v43 = vpop.xlane.xlu1 %3364 }
0x18cd   :  { %v3366_v42 = vmul.f32 0.03125, %v3365_v43 }
0x18cf   :  { %v3367_v44 = vadd.f32 1e-06, %v3366_v42 }
0x18d1   :  { %4556 = vrsqrt.f32 %v3367_v44 }
0x18de   :  { %v4557_v53 = vpop.eup %4556 }
0x18df   :  { %v3369_v54 = vmul.f32 %v4557_v53, %v3358_v31 }
0x18e1   :  { %v3376_v55 = vmul.f32 %v3845_v25, %v3369_v54 }
0x18e3   :  { %4405 = vmatmul.mubr.msk.f32.vlgmr.msra.gmra.mxu0 %vm54_vm0, %v3376_v55 }
0x18e4   :  { %4428 = vmatprep.mubr.msk.f32.mxu0 %vm4624_vm7, %v4623_v23  ;;  %v3557_v23 = vld [vmem:[%s5510_s10] sm:$0x7f] }
0x18e5   :  { %4427 = vmatpush3.xpose.msk.msra.mxu0 %vm54_vm0, %v3557_v23 }
0x19a3   :  { %v3460_v33 = vpop.f32.mrf.mxu0 }
0x19a4   :  { %v3464_v58 = vmax.f32 %v3460_v33, 0.0 }
0x19a5   :  { %v4406_v49 = vpop.f32.mrf.mxu0 }
0x19a6   :  { %4424 = vmatmul.mubr.msk.f32.vlgmr.msra.gmra.mxu1 %vm1860_vm8, %v3464_v58 }
0x1a66   :  { %v3534_v35 = vpop.f32.mrf.mxu1 }
0x1a67   :  { %v3538_v59 = vadd.f32 %v3534_v35, %v3358_v31 }
0x1a68   :  { %v4425_v60 = vpop.f32.mrf.mxu1 }
0x1a69   :  { %v3541_v61 = vmul.f32 %v3538_v59, %v3538_v59 }
0x1a6b   :  { %v3542_v62 = vsel %vm3362_vm10, %v3541_v61, 0.0 }
0x1a6c   :  { %3543 = vadd.xlane.f32.xlu0 %v3542_v62 }
0x1af5   :  { %v3544_v63 = vpop.xlane.xlu0 %3543 }
0x1af6   :  { %v3545_v0 = vmul.f32 0.03125, %v3544_v63 }
0x1af8   :  { %v3546_v1 = vadd.f32 1e-06, %v3545_v0 }
0x1afa   :  { %4558 = vrsqrt.f32 %v3546_v1 }
0x1b07   :  { %v4559_v2 = vpop.eup %4558 }
0x1b08   :  { %v3548_v8 = vmul.f32 %v4559_v2, %v3538_v59 }
0x1b0a   :  { %v3555_v9 = vmul.f32 %v3861_v7, %v3548_v8 }
0x1b0c   :  { %v3556_v10 = vmul.f32 0.17677669, %v3555_v9 }
0x1b0e   :  { %4429 = vmatmul.mubr.msk.f32.vlgmr.msra.gmra.mxu0 %vm54_vm0, %v3556_v10 }
0x1bce   :  { %v3630_v11 = vpop.f32.mrf.mxu0 }
0x1bcf   :  { %v3636_v12 = vsel %vm3634_vm11, %v3630_v11, -inf  ;;  %3635 = vst.msk [vmem:[#allocation2] sm:$0x3] %vm3634_vm11, %v3630_v11 }
0x1bd0   :  { %3637 = vmax.xlane.f32.xlu0 %v3636_v12  ;;  %v4430_v13 = vpop.f32.mrf.mxu0 }
0x1c59   :  { %v3638_v14 = vpop.xlane.xlu0 %3637 }
0x1c5a   :  { %v3639_v15 = vsub.f32 %v3630_v11, %v3638_v14 }
0x1c5c   :  { %v3640_v16 = vmul.f32 1.442695, %v3639_v15 }
0x1c5e   :  { %4560 = vpow2.f32 %v3640_v16 }
0x1c6b   :  { %v4561_v17 = vpop.eup %4560 }
0x1c6c   :  { %v3642_v18 = vsel %vm3634_vm11, %v4561_v17, 0.0 }
0x1c6d   :  { %3643 = vadd.xlane.f32.xlu0 %v3642_v18 }
0x1cf6   :  { %v3644_v19 = vpop.xlane.xlu0 %3643 }
0x1cf7   :  { %4562 = vlog2.f32 %v3644_v19 }
0x1d04   :  { %v4563_v3 = vpop.eup %4562 }
0x1d05   :  { %v3646_v4 = vmul.f32 0.6931472, %v4563_v3 }
0x1d07   :  { %v3647_v41 = vsub.f32 %v3639_v15, %v3646_v4 }
0x1d09   :  { %v3649_v20 = vmul.f32 %v3648_v5, %v3647_v41 }
0x1d0b   :  { %v3650_v39 = vsel %vm3634_vm11, %v3649_v20, 0.0 }
0x1d0c   :  { %3651 = vadd.xlane.f32.xlu1 %v3650_v39 }
0x1d0d   :  { %4579 = shalt.err (!%p4576_p4)
}
0x1d0e   :  { %3676 = dma.vmem_to_hbm [thread:$0]  %s3674_s23, 32, %s5512_s12, [#allocation3]   ;;  %vm3665_vm12 = vcmask 0  }
0x1d0f   :  { %s4626_s27 = smov [#allocation4]  }
0x1d10   :  { %s3683_s1 = sshll.u32 %s4626_s27, 4  ;;  %s3684_s1 = int_to_ptr.vmem [resolvable:$true] %s3683_s1 }
0x1d11   :  { %s4588_s29 = scalar_lea.vmem %s3684_s1, 16  ;;  %s4592_s12 = scalar_lea.vmem %s3684_s1, 32 }
0x1d12   :  { %p4589_p5 = scmp.ne.s32.totalorder %s3684_s1, %s4588_s29  ;;  %p4593_p6 = scmp.lt.s32.totalorder %s3684_s1, %s3684_s1 }
0x1d13   :  { %p4594_p7 = scmp.lt.s32.totalorder %s4592_s12, %s4588_s29 }
0x1d15   :  { %p4595_p8 = por %p4594_p7, %p4593_p6 }
0x1d17   :  { %p4596_p9 = pnand %p4595_p8, %p4589_p5 }
0x1d95   :  { %v3652_v46 = vpop.xlane.xlu1 %3651 }
0x1d96   :  { %v3653_v6 = vrot.slane %v3652_v46, 4 }
0x1d98   :  { %v3654_v22 = vadd.f32 %v3653_v6, %v3652_v46 }
0x1d9a   :  { %v3655_v24 = vrot.slane %v3654_v22, 2 }
0x1d9c   :  { %v3656_v40 = vadd.f32 %v3655_v24, %v3654_v22 }
0x1d9e   :  { %v3657_v26 = vrot.slane %v3656_v40, 1 }
0x1da0   :  { %v3658_v27 = vadd.f32 %v3657_v26, %v3656_v40 }
0x1da2   :  { %4431 = vpush %v3658_v27 }
0x1dd3   :  { %s4432_s11 = spop %4431 }
0x1dd4   :  { %s3660_s26 = ssub.f32 0.0, %s4432_s11 }
0x1dd6   :  { %s3663_s28 = smul.f32 0.5, %s3660_s26 }
0x1dd8   :  { %v3664_v28 = vstv %s3663_s28 }
0x1dd9   :  { %3666 = vst.msk [vmem:[#allocation4] sm:$0x1] %vm3665_vm12, %v3664_v28 }
0x1dda   :  { %4599 = shalt.err (!%p4596_p9)
}
0x1ddb   :  { %3686 = dma.vmem_to_hbm [thread:$0]  %s3684_s1, 16, %s5513_s13, [#allocation5]  }
0x1ddc   :  { %4608 = dma.done.wait [#allocation3], 32  }
0x1ddd   :  { %4609 = vsyncadd [#allocation3], 4294967264 }
0x1dde   :  { %4610 = dma.done.wait [#allocation5], 16  }
0x1ddf   :  { %4611 = vsyncadd [#allocation5], 4294967280 }
0x1de0   :  { %3693 = vsyncpa [#allocation3], 1 }
0x1de1   :  { %3694 = vsyncpa [#allocation5], 1 }

</bundles_post_ra>
